<compile_context>
chip_gen: v7x
topology: tpu7x:2x2x1
jax: 0.10.0
libtpu: 0.0.40
codegen_flags: <defaults>
</compile_context>

<pallas_src>
import numpy as np

import jax
import jax.numpy as jnp
from jax import lax
from jax.experimental import pallas as pl
from jax.experimental.pallas import tpu as pltpu


# ---------------------------------------------------------------------------
# Fused forward pass (single Pallas kernel)
# ---------------------------------------------------------------------------

def flow_model_forward(params, x):
    """FlowModel.forward.  params: list of per-flow dicts, x: (B, C, T) f32.

    Returns {"z": (B, C, T), "log_det": scalar, "loss": scalar}.
    """
    B, C, T = x.shape
    c2 = C // 2
    n_flows = len(params)
    n_layers = len(params[0]["main_w"])
    H = params[0]["in_w"].shape[0]
    N = B * T
    f32, bf16 = jnp.float32, jnp.bfloat16

    # --- pack parameters into stacked, kernel-friendly layouts --------------
    # (tiny arrays; fused into the jitted step — in a training loop hoist this
    #  packing out of the step function)
    W = jnp.stack([p["W"] for p in params]).astype(f32)                   # (F, C, C)
    # Fused permutation + in_layer:  h = (in_w @ W[:c2]) @ z + in_b
    A = jnp.stack([p["in_w"] @ p["W"][:c2] for p in params]).astype(bf16)  # (F, H, C)
    in_b = jnp.stack([p["in_b"] for p in params]).reshape(n_flows, H, 1).astype(f32)
    # Dilated conv weights: torch layout (2H, H, 3) -> (2H, 3H) with column
    # blocks [tap(t-d) | tap(t) | tap(t+d)]; stacked over (flow, layer).
    main_w = jnp.stack([
        jnp.transpose(p["main_w"][l], (0, 2, 1)).reshape(2 * H, 3 * H)
        for p in params for l in range(n_layers)]).astype(bf16)           # (F*L, 2H, 3H)
    skip_w = jnp.stack([p["skip_w"][l]
                        for p in params for l in range(n_layers)]).astype(bf16)  # (F*L, 2H, H)
    out1_w = jnp.stack([p["out1_w"] for p in params]).astype(bf16)        # (F, c2, H)
    out1_b = jnp.stack([p["out1_b"] for p in params]).reshape(n_flows, c2, 1).astype(f32)
    # Zero-row-padded final conv so the coupling update is one dense (C,N) add.
    out2_w = jnp.stack([
        jnp.concatenate([jnp.zeros((c2, c2), f32), p["out2_w"]], axis=0)
        for p in params]).astype(bf16)                                    # (F, C, c2)
    out2_b = jnp.stack([
        jnp.concatenate([jnp.zeros((c2,), f32), p["out2_b"]])
        for p in params]).reshape(n_flows, C, 1).astype(f32)              # (F, C, 1)

    # Constant per-layer tap-validity masks (pure functions of the time index;
    # shared by all flows).  roll(h, +d)[:, n] = h[:, n-d], which is the
    # correct within-batch left tap exactly when t >= d; likewise roll(h, -d)
    # with t < T-d.  Out-of-range taps (zero padding) are masked to 0.
    t_idx = jnp.arange(N, dtype=jnp.int32) % T
    lmask = jnp.stack(
        [(t_idx >= 2 ** (l + 1)).astype(f32) for l in range(n_layers)]
    ).reshape(n_layers, 1, N)
    rmask = jnp.stack(
        [(t_idx < T - 2 ** (l + 1)).astype(f32) for l in range(n_layers)]
    ).reshape(n_layers, 1, N)

    # --- activations: fold batch into lanes: (B, C, T) -> (C, N=B*T) --------
    xt = jnp.transpose(x, (1, 0, 2)).reshape(C, N).astype(f32)

    def kernel(x_ref, lm_ref, rm_ref, w_ref, a_ref, inb_ref, mainw_ref,
               skipw_ref, o1w_ref, o1b_ref, o2w_ref, o2b_ref,
               z_ref, col_ref):
        z = x_ref[...]                                    # (C, N) f32

        for f in range(n_flows):
            z_bf = z.astype(bf16)
            # Permutation1d on the dense slab: y = W_f @ z.  Identity path of
            # the coupling -> keep f32 / HIGHEST so z stays near-exact.
            y = jnp.dot(w_ref[f], z, preferred_element_type=f32,
                        precision=lax.Precision.HIGHEST)                  # (C, N)
            # Fused permutation + NonLinear1d.in_layer.
            h = jnp.dot(a_ref[f], z_bf,
                        preferred_element_type=f32) + inb_ref[f]          # (H, N)

            skip_sum = jnp.zeros((H, N), f32)
            for l in range(n_layers):
                d = 2 ** (l + 1)
                left = pltpu.roll(h, d % N, 1) * lm_ref[l]       # h[:, t-d], 0 if t<d
                right = pltpu.roll(h, (N - d) % N, 1) * rm_ref[l]  # h[:, t+d], 0 if t>=T-d
                # dilated k=3 gated conv == one (2H, 3H) @ (3H, N) matmul.
                # (On v7x's MRB a 3-dot accumulate avoiding the concat may be
                #  preferable; keep the single fused dot for v5e/v6e MRF.)
                taps = jnp.concatenate([left, h, right], axis=0).astype(bf16)
                acc = jnp.dot(mainw_ref[f * n_layers + l], taps,
                              preferred_element_type=f32)                 # (2H, N)
                g = jnp.tanh(acc[:H]) * jax.nn.sigmoid(acc[H:])           # (H, N)
                # gated 1x1 skip conv (no bias)
                s = jnp.dot(skipw_ref[f * n_layers + l], g.astype(bf16),
                            preferred_element_type=f32)                   # (2H, N)
                skip = jnp.tanh(s[:H]) * jax.nn.sigmoid(s[H:])            # (H, N)
                skip_sum = skip_sum + skip
                h = h + skip

            # out_layer: ReLU -> 1x1 conv -> ReLU -> 1x1 conv (zero-padded to C rows).
            u = jnp.maximum(skip_sum, 0.0)
            u = jnp.dot(o1w_ref[f], u.astype(bf16),
                        preferred_element_type=f32) + o1b_ref[f]          # (c2, N)
            u = jnp.maximum(u, 0.0)
            m = jnp.dot(o2w_ref[f], u.astype(bf16),
                        preferred_element_type=f32) + o2b_ref[f]          # (C, N)

            z = y + m                                   # top half: y1, bottom: y2 + m

        z_ref[...] = z                                  # dense (C, N) f32 stores
        # Gaussian term: per-lane-column sum(z^2), fused so z is never re-read
        # from HBM; the tiny per-batch reduce happens outside.
        col_ref[...] = jnp.sum(z * z, axis=0, keepdims=True)              # (1, N)

    z_flat, col = pl.pallas_call(
        kernel,
        out_shape=(jax.ShapeDtypeStruct((C, N), jnp.float32),
                   jax.ShapeDtypeStruct((1, N), jnp.float32)),
    )(xt, lmask, rmask, W, A, in_b, main_w, skip_w,
      out1_w, out1_b, out2_w, out2_b)

    z = z_flat.reshape(C, B, T).transpose(1, 0, 2)      # back to (B, C, T)
    ss = col.reshape(B, T).sum(axis=1)                  # (B,) per-batch sum(z^2)

    # slogdet of the tiny CxC permutation matrices + scalar loss: plain JAX.
    log_det = jnp.float32(0.0)
    for p in params:
        log_det = log_det + T * jnp.linalg.slogdet(p["W"])[1]

    dim = C * T
    log_likelihood = -0.5 * (np.log(2.0 * np.pi) * dim + ss) + log_det
    loss = jnp.mean(-log_likelihood / dim)
    return {"z": z, "log_det": log_det, "loss": loss}


# ---------------------------------------------------------------------------
# Plain-JAX reference (mirrors the PyTorch module; used for the self-check)
# ---------------------------------------------------------------------------

def flow_model_reference(params, x):
    prec = jax.lax.Precision.HIGHEST
    z = x.astype(jnp.float32)
    log_det = jnp.float32(0.0)
    for p in params:
        B, C, T = z.shape
        c2 = C // 2
        H = p["in_w"].shape[0]
        log_det = log_det + T * jnp.linalg.slogdet(p["W"])[1]
        y = jnp.einsum("oc,bct->bot", p["W"], z, precision=prec)
        y1, y2 = y[:, :c2], y[:, c2:]
        h = (jnp.einsum("oc,bct->bot", p["in_w"], y1, precision=prec)
             + p["in_b"][None, :, None])
        skip_sum = jnp.zeros_like(h)
        for layer, (wm, ws) in enumerate(zip(p["main_w"], p["skip_w"])):
            d = 2 ** (layer + 1)
            h_pad = jnp.pad(h, ((0, 0), (0, 0), (d, d)))
            acc = sum(jnp.einsum("oc,bct->bot", wm[:, :, k],
                                 h_pad[:, :, k * d:k * d + T], precision=prec)
                      for k in range(3))
            g = jnp.tanh(acc[:, :H]) * jax.nn.sigmoid(acc[:, H:])
            s = jnp.einsum("oc,bct->bot", ws, g, precision=prec)
            skip = jnp.tanh(s[:, :H]) * jax.nn.sigmoid(s[:, H:])
            skip_sum = skip_sum + skip
            h = h + skip
        u = jax.nn.relu(skip_sum)
        u = (jnp.einsum("oc,bct->bot", p["out1_w"], u, precision=prec)
             + p["out1_b"][None, :, None])
        u = jax.nn.relu(u)
        m = (jnp.einsum("oc,bct->bot", p["out2_w"], u, precision=prec)
             + p["out2_b"][None, :, None])
        z = jnp.concatenate([y1, y2 + m], axis=1)
    B, C, T = z.shape
    dim = C * T
    ss = jnp.sum(z * z, axis=(1, 2))
    ll = -0.5 * (np.log(2.0 * np.pi) * dim + ss) + log_det
    loss = jnp.mean(-ll / dim)
    return {"z": z, "log_det": log_det, "loss": loss}


# ---------------------------------------------------------------------------
# Parameter init (torch-equivalent layouts)
# ---------------------------------------------------------------------------

def init_flow_params(key, channels, hidden, n_layers):
    c2 = channels // 2
    keys = jax.random.split(key, 6 + 2 * n_layers)
    kit = iter(keys)

    # Permutation1d: random orthogonal with det = +1.
    Amat = jax.random.normal(next(kit), (channels, channels), jnp.float32)
    Q, _ = jnp.linalg.qr(Amat)
    Q = jnp.where(jnp.linalg.det(Q) < 0, Q.at[:, 0].set(-Q[:, 0]), Q)

    def unif(k, shape, fan_in):
        b = 1.0 / np.sqrt(fan_in)
        return jax.random.uniform(k, shape, jnp.float32, -b, b)

    return {
        "W": Q,
        # in_layer / out_layer[1]: torch Conv1d default (uniform) init.
        "in_w": unif(next(kit), (hidden, c2), c2),
        "in_b": unif(next(kit), (hidden,), c2),
        # main / skip gated convs: N(0, 0.02), no bias (as in the spec).
        "main_w": [0.02 * jax.random.normal(next(kit), (2 * hidden, hidden, 3),
                                            jnp.float32)
                   for _ in range(n_layers)],
        "skip_w": [0.02 * jax.random.normal(next(kit), (2 * hidden, hidden),
                                            jnp.float32)
                   for _ in range(n_layers)],
        "out1_w": unif(next(kit), (c2, hidden), hidden),
        "out1_b": unif(next(kit), (c2,), hidden),
        # out_layer[-1] is zero-initialised in the PyTorch reference.
        "out2_w": jnp.zeros((c2, c2), jnp.float32),
        "out2_b": jnp.zeros((c2,), jnp.float32),
    }


def init_params(key, channels, hidden, n_layers, n_flows):
    params = []
    for _ in range(n_flows):
        key, sub = jax.random.split(key)
        params.append(init_flow_params(sub, channels, hidden, n_layers))
    return params


def randomize_for_check(params, key):
    """The reference module zero-inits the final conv, which makes the whole
    nonlinear branch a numerical no-op at init.  For the self-check we swap in
    larger random weights so every code path of the fused kernel contributes
    (init semantics above stay spec-faithful)."""
    out = []
    for i, p in enumerate(params):
        L = len(p["main_w"])
        ks = jax.random.split(jax.random.fold_in(key, i), 2 * L + 3)
        q = dict(p)
        q["main_w"] = [0.15 * jax.random.normal(ks[j], p["main_w"][j].shape,
                                                jnp.float32) for j in range(L)]
        q["skip_w"] = [0.30 * jax.random.normal(ks[L + j], p["skip_w"][j].shape,
                                                jnp.float32) for j in range(L)]
        q["out1_w"] = 0.30 * jax.random.normal(ks[2 * L], p["out1_w"].shape,
                                               jnp.float32)
        q["out2_w"] = 0.30 * jax.random.normal(ks[2 * L + 1], p["out2_w"].shape,
                                               jnp.float32)
        q["out2_b"] = 0.10 * jax.random.normal(ks[2 * L + 2], p["out2_b"].shape,
                                               jnp.float32)
        out.append(q)
    return out


# ---------------------------------------------------------------------------

if __name__ == "__main__":
    B, C, T = 2, 8, 128          # batch, channels, time  (N = B*T = 256 lanes)
    H, n_layers, n_flows = 16, 2, 2

    key = jax.random.PRNGKey(0)
    key, kx = jax.random.split(key)
    x = jax.random.normal(kx, (B, C, T), jnp.float32)

    params = init_params(key, C, H, n_layers, n_flows)
    params = randomize_for_check(params, jax.random.PRNGKey(1))

    fwd = jax.jit(flow_model_forward)
    out = fwd(params, x)
    jax.block_until_ready(out["z"])
    jax.block_until_ready(out["loss"])

    assert out["z"].shape == (B, C, T)
    assert out["log_det"].shape == ()
    assert out["loss"].shape == ()

    # Numerical self-check against the plain-JAX (f32, HIGHEST) reference.
    # The nonlinear branch runs with bf16 MXU operands (f32 accumulation), so
    # the tolerance is wider than a pure-f32 comparison would need.
    ref = flow_model_reference(params, x)
    z_err = float(jnp.max(jnp.abs(out["z"] - ref["z"])))
    loss_err = float(jnp.abs(out["loss"] - ref["loss"]))
    assert z_err < 1e-1, f"z mismatch vs reference: max abs err {z_err}"
    assert loss_err < 1e-2, f"loss mismatch vs reference: {loss_err}"

    print("KERNEL_OK")
</pallas_src>

<mosaic_0001>
module attributes {stable_mosaic.version = 11 : i64} {
  func.func @kernel(%arg0: memref<8x256xf32, #tpu.memory_space<vmem>>, %arg1: memref<2x1x256xf32, #tpu.memory_space<vmem>>, %arg2: memref<2x1x256xf32, #tpu.memory_space<vmem>>, %arg3: memref<2x8x8xf32, #tpu.memory_space<vmem>>, %arg4: memref<2x16x8xbf16, #tpu.memory_space<vmem>>, %arg5: memref<2x16x1xf32, #tpu.memory_space<vmem>>, %arg6: memref<4x32x48xbf16, #tpu.memory_space<vmem>>, %arg7: memref<4x32x16xbf16, #tpu.memory_space<vmem>>, %arg8: memref<2x4x16xbf16, #tpu.memory_space<vmem>>, %arg9: memref<2x4x1xf32, #tpu.memory_space<vmem>>, %arg10: memref<2x8x4xbf16, #tpu.memory_space<vmem>>, %arg11: memref<2x8x1xf32, #tpu.memory_space<vmem>>, %arg12: memref<8x256xf32, #tpu.memory_space<vmem>>, %arg13: memref<1x256xf32, #tpu.memory_space<vmem>>) attributes {dimension_semantics = [], scalar_prefetch = 0 : i64, scratch_operands = 0 : i64, tpu.core_type = #tpu.core_type<tc>} {
    %c0 = arith.constant 0 : index
    %c0_0 = arith.constant 0 : index
    %0 = vector.load %arg0[%c0, %c0_0] : memref<8x256xf32, #tpu.memory_space<vmem>>, vector<8x256xf32>
    %1 = arith.truncf %0 : vector<8x256xf32> to vector<8x256xbf16>
    %c0_1 = arith.constant 0 : index
    %c0_2 = arith.constant 0 : index
    %c0_3 = arith.constant 0 : index
    %2 = vector.load %arg3[%c0_1, %c0_2, %c0_3] : memref<2x8x8xf32, #tpu.memory_space<vmem>>, vector<1x8x8xf32>
    %3 = vector.shape_cast %2 : vector<1x8x8xf32> to vector<8x8xf32>
    %cst = arith.constant dense<0.000000e+00> : vector<8x256xf32>
    %4 = tpu.matmul %3, %0, %cst {dimension_numbers = #tpu.dot_dimension_numbers<[1], [0], [0], [1], [0, 0, 1, 1], [], []>, precision = #tpu.contract_precision<fp32>} : vector<8x8xf32>, vector<8x256xf32>, vector<8x256xf32> -> vector<8x256xf32>
    %c0_4 = arith.constant 0 : index
    %c0_5 = arith.constant 0 : index
    %c0_6 = arith.constant 0 : index
    %5 = vector.load %arg4[%c0_4, %c0_5, %c0_6] : memref<2x16x8xbf16, #tpu.memory_space<vmem>>, vector<1x16x8xbf16>
    %6 = vector.shape_cast %5 : vector<1x16x8xbf16> to vector<16x8xbf16>
    %cst_7 = arith.constant dense<0.000000e+00> : vector<16x256xf32>
    %7 = tpu.matmul %6, %1, %cst_7 {dimension_numbers = #tpu.dot_dimension_numbers<[1], [0], [0], [1], [0, 0, 1, 1], [], []>} : vector<16x8xbf16>, vector<8x256xbf16>, vector<16x256xf32> -> vector<16x256xf32>
    %c0_8 = arith.constant 0 : index
    %c0_9 = arith.constant 0 : index
    %c0_10 = arith.constant 0 : index
    %8 = vector.load %arg5[%c0_8, %c0_9, %c0_10] : memref<2x16x1xf32, #tpu.memory_space<vmem>>, vector<1x16x1xf32>
    %9 = vector.shape_cast %8 : vector<1x16x1xf32> to vector<16x1xf32>
    %10 = vector.broadcast %9 : vector<16x1xf32> to vector<16x256xf32>
    %11 = arith.addf %7, %10 : vector<16x256xf32>
    %cst_11 = arith.constant 0.000000e+00 : f32
    %12 = vector.broadcast %cst_11 : f32 to vector<16x256xf32>
    %c2_i32 = arith.constant 2 : i32
    %13 = tpu.dynamic_rotate %11 by %c2_i32 dim 1 : vector<16x256xf32>, i32 -> vector<16x256xf32>
    %c0_12 = arith.constant 0 : index
    %c0_13 = arith.constant 0 : index
    %c0_14 = arith.constant 0 : index
    %14 = vector.load %arg1[%c0_12, %c0_13, %c0_14] : memref<2x1x256xf32, #tpu.memory_space<vmem>>, vector<1x1x256xf32>
    %15 = vector.shape_cast %14 : vector<1x1x256xf32> to vector<1x256xf32>
    %16 = vector.broadcast %15 : vector<1x256xf32> to vector<16x256xf32>
    %17 = arith.mulf %13, %16 : vector<16x256xf32>
    %c254_i32 = arith.constant 254 : i32
    %18 = tpu.dynamic_rotate %11 by %c254_i32 dim 1 : vector<16x256xf32>, i32 -> vector<16x256xf32>
    %c0_15 = arith.constant 0 : index
    %c0_16 = arith.constant 0 : index
    %c0_17 = arith.constant 0 : index
    %19 = vector.load %arg2[%c0_15, %c0_16, %c0_17] : memref<2x1x256xf32, #tpu.memory_space<vmem>>, vector<1x1x256xf32>
    %20 = vector.shape_cast %19 : vector<1x1x256xf32> to vector<1x256xf32>
    %21 = vector.broadcast %20 : vector<1x256xf32> to vector<16x256xf32>
    %22 = arith.mulf %18, %21 : vector<16x256xf32>
    %23 = tpu.concatenate %17, %11, %22 in 0 : vector<16x256xf32>, vector<16x256xf32>, vector<16x256xf32> -> vector<48x256xf32>
    %24 = arith.truncf %23 : vector<48x256xf32> to vector<48x256xbf16>
    %c0_18 = arith.constant 0 : index
    %c0_19 = arith.constant 0 : index
    %c0_20 = arith.constant 0 : index
    %25 = vector.load %arg6[%c0_18, %c0_19, %c0_20] : memref<4x32x48xbf16, #tpu.memory_space<vmem>>, vector<1x32x48xbf16>
    %26 = vector.shape_cast %25 : vector<1x32x48xbf16> to vector<32x48xbf16>
    %cst_21 = arith.constant dense<0.000000e+00> : vector<32x256xf32>
    %27 = tpu.matmul %26, %24, %cst_21 {dimension_numbers = #tpu.dot_dimension_numbers<[1], [0], [0], [1], [0, 0, 1, 1], [], []>} : vector<32x48xbf16>, vector<48x256xbf16>, vector<32x256xf32> -> vector<32x256xf32>
    %28 = vector.extract_strided_slice %27 {offsets = [0, 0], sizes = [16, 256], strides = [1, 1]} : vector<32x256xf32> to vector<16x256xf32>
    %29 = math.tanh %28 : vector<16x256xf32>
    %30 = vector.extract_strided_slice %27 {offsets = [16, 0], sizes = [16, 256], strides = [1, 1]} : vector<32x256xf32> to vector<16x256xf32>
    %31 = arith.negf %30 : vector<16x256xf32>
    %32 = math.exp %31 : vector<16x256xf32>
    %cst_22 = arith.constant 1.000000e+00 : f32
    %33 = vector.broadcast %cst_22 : f32 to vector<16x256xf32>
    %34 = arith.addf %33, %32 : vector<16x256xf32>
    %35 = arith.divf %33, %34 : vector<16x256xf32>
    %36 = arith.mulf %29, %35 : vector<16x256xf32>
    %c0_23 = arith.constant 0 : index
    %c0_24 = arith.constant 0 : index
    %c0_25 = arith.constant 0 : index
    %37 = vector.load %arg7[%c0_23, %c0_24, %c0_25] : memref<4x32x16xbf16, #tpu.memory_space<vmem>>, vector<1x32x16xbf16>
    %38 = vector.shape_cast %37 : vector<1x32x16xbf16> to vector<32x16xbf16>
    %39 = arith.truncf %36 : vector<16x256xf32> to vector<16x256xbf16>
    %cst_26 = arith.constant dense<0.000000e+00> : vector<32x256xf32>
    %40 = tpu.matmul %38, %39, %cst_26 {dimension_numbers = #tpu.dot_dimension_numbers<[1], [0], [0], [1], [0, 0, 1, 1], [], []>} : vector<32x16xbf16>, vector<16x256xbf16>, vector<32x256xf32> -> vector<32x256xf32>
    %41 = vector.extract_strided_slice %40 {offsets = [0, 0], sizes = [16, 256], strides = [1, 1]} : vector<32x256xf32> to vector<16x256xf32>
    %42 = math.tanh %41 : vector<16x256xf32>
    %43 = vector.extract_strided_slice %40 {offsets = [16, 0], sizes = [16, 256], strides = [1, 1]} : vector<32x256xf32> to vector<16x256xf32>
    %44 = arith.negf %43 : vector<16x256xf32>
    %45 = math.exp %44 : vector<16x256xf32>
    %cst_27 = arith.constant 1.000000e+00 : f32
    %46 = vector.broadcast %cst_27 : f32 to vector<16x256xf32>
    %47 = arith.addf %46, %45 : vector<16x256xf32>
    %48 = arith.divf %46, %47 : vector<16x256xf32>
    %49 = arith.mulf %42, %48 : vector<16x256xf32>
    %50 = arith.addf %12, %49 : vector<16x256xf32>
    %51 = arith.addf %11, %49 : vector<16x256xf32>
    %c4_i32 = arith.constant 4 : i32
    %52 = tpu.dynamic_rotate %51 by %c4_i32 dim 1 : vector<16x256xf32>, i32 -> vector<16x256xf32>
    %c1 = arith.constant 1 : index
    %c0_28 = arith.constant 0 : index
    %c0_29 = arith.constant 0 : index
    %53 = vector.load %arg1[%c1, %c0_28, %c0_29] : memref<2x1x256xf32, #tpu.memory_space<vmem>>, vector<1x1x256xf32>
    %54 = vector.shape_cast %53 : vector<1x1x256xf32> to vector<1x256xf32>
    %55 = vector.broadcast %54 : vector<1x256xf32> to vector<16x256xf32>
    %56 = arith.mulf %52, %55 : vector<16x256xf32>
    %c252_i32 = arith.constant 252 : i32
    %57 = tpu.dynamic_rotate %51 by %c252_i32 dim 1 : vector<16x256xf32>, i32 -> vector<16x256xf32>
    %c1_30 = arith.constant 1 : index
    %c0_31 = arith.constant 0 : index
    %c0_32 = arith.constant 0 : index
    %58 = vector.load %arg2[%c1_30, %c0_31, %c0_32] : memref<2x1x256xf32, #tpu.memory_space<vmem>>, vector<1x1x256xf32>
    %59 = vector.shape_cast %58 : vector<1x1x256xf32> to vector<1x256xf32>
    %60 = vector.broadcast %59 : vector<1x256xf32> to vector<16x256xf32>
    %61 = arith.mulf %57, %60 : vector<16x256xf32>
    %62 = tpu.concatenate %56, %51, %61 in 0 : vector<16x256xf32>, vector<16x256xf32>, vector<16x256xf32> -> vector<48x256xf32>
    %63 = arith.truncf %62 : vector<48x256xf32> to vector<48x256xbf16>
    %c1_33 = arith.constant 1 : index
    %c0_34 = arith.constant 0 : index
    %c0_35 = arith.constant 0 : index
    %64 = vector.load %arg6[%c1_33, %c0_34, %c0_35] : memref<4x32x48xbf16, #tpu.memory_space<vmem>>, vector<1x32x48xbf16>
    %65 = vector.shape_cast %64 : vector<1x32x48xbf16> to vector<32x48xbf16>
    %cst_36 = arith.constant dense<0.000000e+00> : vector<32x256xf32>
    %66 = tpu.matmul %65, %63, %cst_36 {dimension_numbers = #tpu.dot_dimension_numbers<[1], [0], [0], [1], [0, 0, 1, 1], [], []>} : vector<32x48xbf16>, vector<48x256xbf16>, vector<32x256xf32> -> vector<32x256xf32>
    %67 = vector.extract_strided_slice %66 {offsets = [0, 0], sizes = [16, 256], strides = [1, 1]} : vector<32x256xf32> to vector<16x256xf32>
    %68 = math.tanh %67 : vector<16x256xf32>
    %69 = vector.extract_strided_slice %66 {offsets = [16, 0], sizes = [16, 256], strides = [1, 1]} : vector<32x256xf32> to vector<16x256xf32>
    %70 = arith.negf %69 : vector<16x256xf32>
    %71 = math.exp %70 : vector<16x256xf32>
    %cst_37 = arith.constant 1.000000e+00 : f32
    %72 = vector.broadcast %cst_37 : f32 to vector<16x256xf32>
    %73 = arith.addf %72, %71 : vector<16x256xf32>
    %74 = arith.divf %72, %73 : vector<16x256xf32>
    %75 = arith.mulf %68, %74 : vector<16x256xf32>
    %c1_38 = arith.constant 1 : index
    %c0_39 = arith.constant 0 : index
    %c0_40 = arith.constant 0 : index
    %76 = vector.load %arg7[%c1_38, %c0_39, %c0_40] : memref<4x32x16xbf16, #tpu.memory_space<vmem>>, vector<1x32x16xbf16>
    %77 = vector.shape_cast %76 : vector<1x32x16xbf16> to vector<32x16xbf16>
    %78 = arith.truncf %75 : vector<16x256xf32> to vector<16x256xbf16>
    %cst_41 = arith.constant dense<0.000000e+00> : vector<32x256xf32>
    %79 = tpu.matmul %77, %78, %cst_41 {dimension_numbers = #tpu.dot_dimension_numbers<[1], [0], [0], [1], [0, 0, 1, 1], [], []>} : vector<32x16xbf16>, vector<16x256xbf16>, vector<32x256xf32> -> vector<32x256xf32>
    %80 = vector.extract_strided_slice %79 {offsets = [0, 0], sizes = [16, 256], strides = [1, 1]} : vector<32x256xf32> to vector<16x256xf32>
    %81 = math.tanh %80 : vector<16x256xf32>
    %82 = vector.extract_strided_slice %79 {offsets = [16, 0], sizes = [16, 256], strides = [1, 1]} : vector<32x256xf32> to vector<16x256xf32>
    %83 = arith.negf %82 : vector<16x256xf32>
    %84 = math.exp %83 : vector<16x256xf32>
    %cst_42 = arith.constant 1.000000e+00 : f32
    %85 = vector.broadcast %cst_42 : f32 to vector<16x256xf32>
    %86 = arith.addf %85, %84 : vector<16x256xf32>
    %87 = arith.divf %85, %86 : vector<16x256xf32>
    %88 = arith.mulf %81, %87 : vector<16x256xf32>
    %89 = arith.addf %50, %88 : vector<16x256xf32>
    %cst_43 = arith.constant 0.000000e+00 : f32
    %90 = vector.broadcast %cst_43 : f32 to vector<16x256xf32>
    %91 = arith.maximumf %89, %90 : vector<16x256xf32>
    %c0_44 = arith.constant 0 : index
    %c0_45 = arith.constant 0 : index
    %c0_46 = arith.constant 0 : index
    %92 = vector.load %arg8[%c0_44, %c0_45, %c0_46] : memref<2x4x16xbf16, #tpu.memory_space<vmem>>, vector<1x4x16xbf16>
    %93 = vector.shape_cast %92 : vector<1x4x16xbf16> to vector<4x16xbf16>
    %94 = arith.truncf %91 : vector<16x256xf32> to vector<16x256xbf16>
    %cst_47 = arith.constant dense<0.000000e+00> : vector<4x256xf32>
    %95 = tpu.matmul %93, %94, %cst_47 {dimension_numbers = #tpu.dot_dimension_numbers<[1], [0], [0], [1], [0, 0, 1, 1], [], []>} : vector<4x16xbf16>, vector<16x256xbf16>, vector<4x256xf32> -> vector<4x256xf32>
    %c0_48 = arith.constant 0 : index
    %c0_49 = arith.constant 0 : index
    %c0_50 = arith.constant 0 : index
    %96 = vector.load %arg9[%c0_48, %c0_49, %c0_50] : memref<2x4x1xf32, #tpu.memory_space<vmem>>, vector<1x4x1xf32>
    %97 = vector.shape_cast %96 : vector<1x4x1xf32> to vector<4x1xf32>
    %98 = vector.broadcast %97 : vector<4x1xf32> to vector<4x256xf32>
    %99 = arith.addf %95, %98 : vector<4x256xf32>
    %cst_51 = arith.constant 0.000000e+00 : f32
    %100 = vector.broadcast %cst_51 : f32 to vector<4x256xf32>
    %101 = arith.maximumf %99, %100 : vector<4x256xf32>
    %c0_52 = arith.constant 0 : index
    %c0_53 = arith.constant 0 : index
    %c0_54 = arith.constant 0 : index
    %102 = vector.load %arg10[%c0_52, %c0_53, %c0_54] : memref<2x8x4xbf16, #tpu.memory_space<vmem>>, vector<1x8x4xbf16>
    %103 = vector.shape_cast %102 : vector<1x8x4xbf16> to vector<8x4xbf16>
    %104 = arith.truncf %101 : vector<4x256xf32> to vector<4x256xbf16>
    %cst_55 = arith.constant dense<0.000000e+00> : vector<8x256xf32>
    %105 = tpu.matmul %103, %104, %cst_55 {dimension_numbers = #tpu.dot_dimension_numbers<[1], [0], [0], [1], [0, 0, 1, 1], [], []>} : vector<8x4xbf16>, vector<4x256xbf16>, vector<8x256xf32> -> vector<8x256xf32>
    %c0_56 = arith.constant 0 : index
    %c0_57 = arith.constant 0 : index
    %c0_58 = arith.constant 0 : index
    %106 = vector.load %arg11[%c0_56, %c0_57, %c0_58] : memref<2x8x1xf32, #tpu.memory_space<vmem>>, vector<1x8x1xf32>
    %107 = vector.shape_cast %106 : vector<1x8x1xf32> to vector<8x1xf32>
    %108 = vector.broadcast %107 : vector<8x1xf32> to vector<8x256xf32>
    %109 = arith.addf %105, %108 : vector<8x256xf32>
    %110 = arith.addf %4, %109 : vector<8x256xf32>
    %111 = arith.truncf %110 : vector<8x256xf32> to vector<8x256xbf16>
    %c1_59 = arith.constant 1 : index
    %c0_60 = arith.constant 0 : index
    %c0_61 = arith.constant 0 : index
    %112 = vector.load %arg3[%c1_59, %c0_60, %c0_61] : memref<2x8x8xf32, #tpu.memory_space<vmem>>, vector<1x8x8xf32>
    %113 = vector.shape_cast %112 : vector<1x8x8xf32> to vector<8x8xf32>
    %cst_62 = arith.constant dense<0.000000e+00> : vector<8x256xf32>
    %114 = tpu.matmul %113, %110, %cst_62 {dimension_numbers = #tpu.dot_dimension_numbers<[1], [0], [0], [1], [0, 0, 1, 1], [], []>, precision = #tpu.contract_precision<fp32>} : vector<8x8xf32>, vector<8x256xf32>, vector<8x256xf32> -> vector<8x256xf32>
    %c1_63 = arith.constant 1 : index
    %c0_64 = arith.constant 0 : index
    %c0_65 = arith.constant 0 : index
    %115 = vector.load %arg4[%c1_63, %c0_64, %c0_65] : memref<2x16x8xbf16, #tpu.memory_space<vmem>>, vector<1x16x8xbf16>
    %116 = vector.shape_cast %115 : vector<1x16x8xbf16> to vector<16x8xbf16>
    %cst_66 = arith.constant dense<0.000000e+00> : vector<16x256xf32>
    %117 = tpu.matmul %116, %111, %cst_66 {dimension_numbers = #tpu.dot_dimension_numbers<[1], [0], [0], [1], [0, 0, 1, 1], [], []>} : vector<16x8xbf16>, vector<8x256xbf16>, vector<16x256xf32> -> vector<16x256xf32>
    %c1_67 = arith.constant 1 : index
    %c0_68 = arith.constant 0 : index
    %c0_69 = arith.constant 0 : index
    %118 = vector.load %arg5[%c1_67, %c0_68, %c0_69] : memref<2x16x1xf32, #tpu.memory_space<vmem>>, vector<1x16x1xf32>
    %119 = vector.shape_cast %118 : vector<1x16x1xf32> to vector<16x1xf32>
    %120 = vector.broadcast %119 : vector<16x1xf32> to vector<16x256xf32>
    %121 = arith.addf %117, %120 : vector<16x256xf32>
    %cst_70 = arith.constant 0.000000e+00 : f32
    %122 = vector.broadcast %cst_70 : f32 to vector<16x256xf32>
    %c2_i32_71 = arith.constant 2 : i32
    %123 = tpu.dynamic_rotate %121 by %c2_i32_71 dim 1 : vector<16x256xf32>, i32 -> vector<16x256xf32>
    %c0_72 = arith.constant 0 : index
    %c0_73 = arith.constant 0 : index
    %c0_74 = arith.constant 0 : index
    %124 = vector.load %arg1[%c0_72, %c0_73, %c0_74] : memref<2x1x256xf32, #tpu.memory_space<vmem>>, vector<1x1x256xf32>
    %125 = vector.shape_cast %124 : vector<1x1x256xf32> to vector<1x256xf32>
    %126 = vector.broadcast %125 : vector<1x256xf32> to vector<16x256xf32>
    %127 = arith.mulf %123, %126 : vector<16x256xf32>
    %c254_i32_75 = arith.constant 254 : i32
    %128 = tpu.dynamic_rotate %121 by %c254_i32_75 dim 1 : vector<16x256xf32>, i32 -> vector<16x256xf32>
    %c0_76 = arith.constant 0 : index
    %c0_77 = arith.constant 0 : index
    %c0_78 = arith.constant 0 : index
    %129 = vector.load %arg2[%c0_76, %c0_77, %c0_78] : memref<2x1x256xf32, #tpu.memory_space<vmem>>, vector<1x1x256xf32>
    %130 = vector.shape_cast %129 : vector<1x1x256xf32> to vector<1x256xf32>
    %131 = vector.broadcast %130 : vector<1x256xf32> to vector<16x256xf32>
    %132 = arith.mulf %128, %131 : vector<16x256xf32>
    %133 = tpu.concatenate %127, %121, %132 in 0 : vector<16x256xf32>, vector<16x256xf32>, vector<16x256xf32> -> vector<48x256xf32>
    %134 = arith.truncf %133 : vector<48x256xf32> to vector<48x256xbf16>
    %c2 = arith.constant 2 : index
    %c0_79 = arith.constant 0 : index
    %c0_80 = arith.constant 0 : index
    %135 = vector.load %arg6[%c2, %c0_79, %c0_80] : memref<4x32x48xbf16, #tpu.memory_space<vmem>>, vector<1x32x48xbf16>
    %136 = vector.shape_cast %135 : vector<1x32x48xbf16> to vector<32x48xbf16>
    %cst_81 = arith.constant dense<0.000000e+00> : vector<32x256xf32>
    %137 = tpu.matmul %136, %134, %cst_81 {dimension_numbers = #tpu.dot_dimension_numbers<[1], [0], [0], [1], [0, 0, 1, 1], [], []>} : vector<32x48xbf16>, vector<48x256xbf16>, vector<32x256xf32> -> vector<32x256xf32>
    %138 = vector.extract_strided_slice %137 {offsets = [0, 0], sizes = [16, 256], strides = [1, 1]} : vector<32x256xf32> to vector<16x256xf32>
    %139 = math.tanh %138 : vector<16x256xf32>
    %140 = vector.extract_strided_slice %137 {offsets = [16, 0], sizes = [16, 256], strides = [1, 1]} : vector<32x256xf32> to vector<16x256xf32>
    %141 = arith.negf %140 : vector<16x256xf32>
    %142 = math.exp %141 : vector<16x256xf32>
    %cst_82 = arith.constant 1.000000e+00 : f32
    %143 = vector.broadcast %cst_82 : f32 to vector<16x256xf32>
    %144 = arith.addf %143, %142 : vector<16x256xf32>
    %145 = arith.divf %143, %144 : vector<16x256xf32>
    %146 = arith.mulf %139, %145 : vector<16x256xf32>
    %c2_83 = arith.constant 2 : index
    %c0_84 = arith.constant 0 : index
    %c0_85 = arith.constant 0 : index
    %147 = vector.load %arg7[%c2_83, %c0_84, %c0_85] : memref<4x32x16xbf16, #tpu.memory_space<vmem>>, vector<1x32x16xbf16>
    %148 = vector.shape_cast %147 : vector<1x32x16xbf16> to vector<32x16xbf16>
    %149 = arith.truncf %146 : vector<16x256xf32> to vector<16x256xbf16>
    %cst_86 = arith.constant dense<0.000000e+00> : vector<32x256xf32>
    %150 = tpu.matmul %148, %149, %cst_86 {dimension_numbers = #tpu.dot_dimension_numbers<[1], [0], [0], [1], [0, 0, 1, 1], [], []>} : vector<32x16xbf16>, vector<16x256xbf16>, vector<32x256xf32> -> vector<32x256xf32>
    %151 = vector.extract_strided_slice %150 {offsets = [0, 0], sizes = [16, 256], strides = [1, 1]} : vector<32x256xf32> to vector<16x256xf32>
    %152 = math.tanh %151 : vector<16x256xf32>
    %153 = vector.extract_strided_slice %150 {offsets = [16, 0], sizes = [16, 256], strides = [1, 1]} : vector<32x256xf32> to vector<16x256xf32>
    %154 = arith.negf %153 : vector<16x256xf32>
    %155 = math.exp %154 : vector<16x256xf32>
    %cst_87 = arith.constant 1.000000e+00 : f32
    %156 = vector.broadcast %cst_87 : f32 to vector<16x256xf32>
    %157 = arith.addf %156, %155 : vector<16x256xf32>
    %158 = arith.divf %156, %157 : vector<16x256xf32>
    %159 = arith.mulf %152, %158 : vector<16x256xf32>
    %160 = arith.addf %122, %159 : vector<16x256xf32>
    %161 = arith.addf %121, %159 : vector<16x256xf32>
    %c4_i32_88 = arith.constant 4 : i32
    %162 = tpu.dynamic_rotate %161 by %c4_i32_88 dim 1 : vector<16x256xf32>, i32 -> vector<16x256xf32>
    %c1_89 = arith.constant 1 : index
    %c0_90 = arith.constant 0 : index
    %c0_91 = arith.constant 0 : index
    %163 = vector.load %arg1[%c1_89, %c0_90, %c0_91] : memref<2x1x256xf32, #tpu.memory_space<vmem>>, vector<1x1x256xf32>
    %164 = vector.shape_cast %163 : vector<1x1x256xf32> to vector<1x256xf32>
    %165 = vector.broadcast %164 : vector<1x256xf32> to vector<16x256xf32>
    %166 = arith.mulf %162, %165 : vector<16x256xf32>
    %c252_i32_92 = arith.constant 252 : i32
    %167 = tpu.dynamic_rotate %161 by %c252_i32_92 dim 1 : vector<16x256xf32>, i32 -> vector<16x256xf32>
    %c1_93 = arith.constant 1 : index
    %c0_94 = arith.constant 0 : index
    %c0_95 = arith.constant 0 : index
    %168 = vector.load %arg2[%c1_93, %c0_94, %c0_95] : memref<2x1x256xf32, #tpu.memory_space<vmem>>, vector<1x1x256xf32>
    %169 = vector.shape_cast %168 : vector<1x1x256xf32> to vector<1x256xf32>
    %170 = vector.broadcast %169 : vector<1x256xf32> to vector<16x256xf32>
    %171 = arith.mulf %167, %170 : vector<16x256xf32>
    %172 = tpu.concatenate %166, %161, %171 in 0 : vector<16x256xf32>, vector<16x256xf32>, vector<16x256xf32> -> vector<48x256xf32>
    %173 = arith.truncf %172 : vector<48x256xf32> to vector<48x256xbf16>
    %c3 = arith.constant 3 : index
    %c0_96 = arith.constant 0 : index
    %c0_97 = arith.constant 0 : index
    %174 = vector.load %arg6[%c3, %c0_96, %c0_97] : memref<4x32x48xbf16, #tpu.memory_space<vmem>>, vector<1x32x48xbf16>
    %175 = vector.shape_cast %174 : vector<1x32x48xbf16> to vector<32x48xbf16>
    %cst_98 = arith.constant dense<0.000000e+00> : vector<32x256xf32>
    %176 = tpu.matmul %175, %173, %cst_98 {dimension_numbers = #tpu.dot_dimension_numbers<[1], [0], [0], [1], [0, 0, 1, 1], [], []>} : vector<32x48xbf16>, vector<48x256xbf16>, vector<32x256xf32> -> vector<32x256xf32>
    %177 = vector.extract_strided_slice %176 {offsets = [0, 0], sizes = [16, 256], strides = [1, 1]} : vector<32x256xf32> to vector<16x256xf32>
    %178 = math.tanh %177 : vector<16x256xf32>
    %179 = vector.extract_strided_slice %176 {offsets = [16, 0], sizes = [16, 256], strides = [1, 1]} : vector<32x256xf32> to vector<16x256xf32>
    %180 = arith.negf %179 : vector<16x256xf32>
    %181 = math.exp %180 : vector<16x256xf32>
    %cst_99 = arith.constant 1.000000e+00 : f32
    %182 = vector.broadcast %cst_99 : f32 to vector<16x256xf32>
    %183 = arith.addf %182, %181 : vector<16x256xf32>
    %184 = arith.divf %182, %183 : vector<16x256xf32>
    %185 = arith.mulf %178, %184 : vector<16x256xf32>
    %c3_100 = arith.constant 3 : index
    %c0_101 = arith.constant 0 : index
    %c0_102 = arith.constant 0 : index
    %186 = vector.load %arg7[%c3_100, %c0_101, %c0_102] : memref<4x32x16xbf16, #tpu.memory_space<vmem>>, vector<1x32x16xbf16>
    %187 = vector.shape_cast %186 : vector<1x32x16xbf16> to vector<32x16xbf16>
    %188 = arith.truncf %185 : vector<16x256xf32> to vector<16x256xbf16>
    %cst_103 = arith.constant dense<0.000000e+00> : vector<32x256xf32>
    %189 = tpu.matmul %187, %188, %cst_103 {dimension_numbers = #tpu.dot_dimension_numbers<[1], [0], [0], [1], [0, 0, 1, 1], [], []>} : vector<32x16xbf16>, vector<16x256xbf16>, vector<32x256xf32> -> vector<32x256xf32>
    %190 = vector.extract_strided_slice %189 {offsets = [0, 0], sizes = [16, 256], strides = [1, 1]} : vector<32x256xf32> to vector<16x256xf32>
    %191 = math.tanh %190 : vector<16x256xf32>
    %192 = vector.extract_strided_slice %189 {offsets = [16, 0], sizes = [16, 256], strides = [1, 1]} : vector<32x256xf32> to vector<16x256xf32>
    %193 = arith.negf %192 : vector<16x256xf32>
    %194 = math.exp %193 : vector<16x256xf32>
    %cst_104 = arith.constant 1.000000e+00 : f32
    %195 = vector.broadcast %cst_104 : f32 to vector<16x256xf32>
    %196 = arith.addf %195, %194 : vector<16x256xf32>
    %197 = arith.divf %195, %196 : vector<16x256xf32>
    %198 = arith.mulf %191, %197 : vector<16x256xf32>
    %199 = arith.addf %160, %198 : vector<16x256xf32>
    %cst_105 = arith.constant 0.000000e+00 : f32
    %200 = vector.broadcast %cst_105 : f32 to vector<16x256xf32>
    %201 = arith.maximumf %199, %200 : vector<16x256xf32>
    %c1_106 = arith.constant 1 : index
    %c0_107 = arith.constant 0 : index
    %c0_108 = arith.constant 0 : index
    %202 = vector.load %arg8[%c1_106, %c0_107, %c0_108] : memref<2x4x16xbf16, #tpu.memory_space<vmem>>, vector<1x4x16xbf16>
    %203 = vector.shape_cast %202 : vector<1x4x16xbf16> to vector<4x16xbf16>
    %204 = arith.truncf %201 : vector<16x256xf32> to vector<16x256xbf16>
    %cst_109 = arith.constant dense<0.000000e+00> : vector<4x256xf32>
    %205 = tpu.matmul %203, %204, %cst_109 {dimension_numbers = #tpu.dot_dimension_numbers<[1], [0], [0], [1], [0, 0, 1, 1], [], []>} : vector<4x16xbf16>, vector<16x256xbf16>, vector<4x256xf32> -> vector<4x256xf32>
    %c1_110 = arith.constant 1 : index
    %c0_111 = arith.constant 0 : index
    %c0_112 = arith.constant 0 : index
    %206 = vector.load %arg9[%c1_110, %c0_111, %c0_112] : memref<2x4x1xf32, #tpu.memory_space<vmem>>, vector<1x4x1xf32>
    %207 = vector.shape_cast %206 : vector<1x4x1xf32> to vector<4x1xf32>
    %208 = vector.broadcast %207 : vector<4x1xf32> to vector<4x256xf32>
    %209 = arith.addf %205, %208 : vector<4x256xf32>
    %cst_113 = arith.constant 0.000000e+00 : f32
    %210 = vector.broadcast %cst_113 : f32 to vector<4x256xf32>
    %211 = arith.maximumf %209, %210 : vector<4x256xf32>
    %c1_114 = arith.constant 1 : index
    %c0_115 = arith.constant 0 : index
    %c0_116 = arith.constant 0 : index
    %212 = vector.load %arg10[%c1_114, %c0_115, %c0_116] : memref<2x8x4xbf16, #tpu.memory_space<vmem>>, vector<1x8x4xbf16>
    %213 = vector.shape_cast %212 : vector<1x8x4xbf16> to vector<8x4xbf16>
    %214 = arith.truncf %211 : vector<4x256xf32> to vector<4x256xbf16>
    %cst_117 = arith.constant dense<0.000000e+00> : vector<8x256xf32>
    %215 = tpu.matmul %213, %214, %cst_117 {dimension_numbers = #tpu.dot_dimension_numbers<[1], [0], [0], [1], [0, 0, 1, 1], [], []>} : vector<8x4xbf16>, vector<4x256xbf16>, vector<8x256xf32> -> vector<8x256xf32>
    %c1_118 = arith.constant 1 : index
    %c0_119 = arith.constant 0 : index
    %c0_120 = arith.constant 0 : index
    %216 = vector.load %arg11[%c1_118, %c0_119, %c0_120] : memref<2x8x1xf32, #tpu.memory_space<vmem>>, vector<1x8x1xf32>
    %217 = vector.shape_cast %216 : vector<1x8x1xf32> to vector<8x1xf32>
    %218 = vector.broadcast %217 : vector<8x1xf32> to vector<8x256xf32>
    %219 = arith.addf %215, %218 : vector<8x256xf32>
    %220 = arith.addf %114, %219 : vector<8x256xf32>
    %c0_121 = arith.constant 0 : index
    %c0_122 = arith.constant 0 : index
    %221 = vector.load %arg12[%c0_121, %c0_122] : memref<8x256xf32, #tpu.memory_space<vmem>>, vector<8x256xf32>
    tpu.vector_store %arg12[%c0_121, %c0_122], %220 {strides = array<i32>} : memref<8x256xf32, #tpu.memory_space<vmem>>, vector<8x256xf32>,
    %222 = arith.mulf %220, %220 : vector<8x256xf32>
    %cst_123 = arith.constant dense<0.000000e+00> : vector<256xf32>
    %223 = vector.multi_reduction <add>, %222, %cst_123 [0] : vector<8x256xf32> to vector<256xf32>
    %224 = vector.shape_cast %223 : vector<256xf32> to vector<1x256xf32>
    %c0_124 = arith.constant 0 : index
    %c0_125 = arith.constant 0 : index
    %225 = vector.load %arg13[%c0_124, %c0_125] : memref<1x256xf32, #tpu.memory_space<vmem>>, vector<1x256xf32>
    tpu.vector_store %arg13[%c0_124, %c0_125], %224 {strides = array<i32>} : memref<1x256xf32, #tpu.memory_space<vmem>>, vector<1x256xf32>,
    return
  }
}

</mosaic_0001>

<bundles_post_ra>
// kernel: custom-call.9
= control target key start
LH: loop header
LB: loop body
LE: loop exit
PB: predicated region body
PF: predicated region fallthrough
CT: control target
= control target key end

     0   :  { %5 = vsyncpa [#allocation4], 0  ;;  %s740_s0 = inlined_call_operand.vmem [shape: f32[8,8], index: 0, kind: input, shape index: {}]   ;;  %s741_s1 = inlined_call_operand.vmem [shape: f32[8,8], index: 1, kind: output, shape index: {0}]   ;;  %s742_s2 = inlined_call_operand.hbm [shape: s32[8], index: 2, kind: output, shape index: {1}]   ;;  %s743_s3 = inlined_call_operand.hbm [shape: s32[8], index: 3, kind: output, shape index: {2}]  }
   0x1   :  { %6 = vsyncpa [#allocation7], 0  ;;  %s629_s12 = smov [#allocation0]   ;;  %s633_s15 = smov %s740_s0  }
   0x2 LB: > { %v54_v0 = vld [vmem:[%s635_s15] sm:$0xff]  ;;  %s56_s15 = scalar_lea.vmem %s635_s15, 8   ;;  %s635_s15 = sphi %s633_s15, %s56_s15   ;;  %s631_s12 = sphi %s629_s12, %s57_s12  }
   0x3   : > { %55 = vst [vmem:[%s631_s12] sm:$0xff] %v54_v0  ;;  %s57_s12 = scalar_lea.vmem %s631_s12, 8   ;;  %p51_p0 = scmp.gt.s32.totalorder %s56_s15, %s740_s0 }
   0x4   :  { %v72_v2 = vlaneseq (%p51_p0)  ;;  %v649_v3 = vmov (%p51_p0), 0   ;;  %s682_s18 = smov (%p51_p0), 0  }
   0x5   :  { %53 = sbr.rel (!%p51_p0) target bundleno = 2 (0x2), region = 123  ;;  %71 = vst [vmem:[#allocation2] sm:$0x1] (%p51_p0), %v649_v3 }
   0x6   :  { %v679_v4 = vshrl.u32 (%p51_p0), %v72_v2, 7 }
   0x8   :  { %76 = vst [vmem:[#allocation8] sm:$0xff] (%p51_p0), %v679_v4 }
   0xa   :  { %v69_v1 = vld [vmem:[#allocation0] sm:$0xff] (%p51_p0) }
   0xb   :  { %70 = vst [vmem:[#allocation1] sm:$0xff] (%p51_p0), %v69_v1 }
   0xc LB: > { %v688_v7 = vstv %s639_s18  ;;  %s133_s0 = ssub.s32 128, %s639_s18  ;;  %v139_v37 = vand.u32 127, %v72_v2  ;;  %v142_v39 = vld [vmem:[#allocation2] ss:$0 sm:$0xff]  ;;  %s145_s19 = scalar_lea.vmem [#allocation1], %s639_s18  ;;  %s639_s18 = sphi %s682_s18, %s82_s18  }
   0xd   : > { %vm91_vm0 = vcmp.ge.s32.totalorder %v679_v4, %v688_v7  ;;  %s151_s21 = scalar_lea.vmem [#allocation8], %s639_s18  ;;  %vm171_vm13 = vcmp.gt.s32.totalorder %v679_v4, %v688_v7  ;;  %s82_s18 = sadd.s32 1, %s639_s18  }
   0xe   : > { %vm163_vm10 = vcmp.gt.s32.totalorder %v139_v37, %v688_v7  ;;  %vm140_vm11 = vcmp.eq.s32.totalorder %v139_v37, %v688_v7  ;;  %p79_p1 = scmp.ge.s32.totalorder %s82_s18, 8  }
   0xf   : > { %v153_v41 = vld [vmem:[%s151_s21] ss:$0 sm:$0xff]  ;;  %vm175_vm15 = vmand %vm171_vm13, %vm140_vm11  ;;  %s641_s26 = smov (%p79_p1), %s741_s1   ;;  %s645_s27 = smov (%p79_p1), [#allocation1]  }
  0x12   : > { %v87_v5 = vld [vmem:[#allocation1] sm:$0xff]  ;;  %v147_v40 = vld [vmem:[%s145_s19] ss:$0 sm:$0xff] }
  0x13   : > { %v88_v6 = vand.u32 2147483647, %v87_v5 }
  0x15   : > { %vm388_vm1 = vcmp.gt.f32.partialorder %v88_v6, -inf }
  0x16   : > { %vm95_vm2 = vmand %vm91_vm0, %vm388_vm1 }
  0x17   : > { %v96_v8 = vsel %vm95_vm2, %v679_v4, %v688_v7  ;;  %v97_v9 = vsel %vm95_vm2, %v88_v6, -inf }
  0x18   : > { %v98_v10 = vrot.slane %v97_v9, 1  ;;  %v99_v11 = vrot.slane %v96_v8, 1 }
  0x1a   : > { %vm100_vm3 = vcmp.ge.f32.partialorder %v98_v10, %v97_v9  ;;  %v103_v12 = vrot.slane %v98_v10, 1  ;;  %v104_v13 = vrot.slane %v99_v11, 1 }
  0x1b   : > { %v101_v14 = vsel %vm100_vm3, %v98_v10, %v97_v9  ;;  %v102_v15 = vsel %vm100_vm3, %v99_v11, %v96_v8 }
  0x1c   : > { %vm105_vm4 = vcmp.ge.f32.partialorder %v103_v12, %v101_v14  ;;  %v108_v16 = vrot.slane %v103_v12, 1  ;;  %v109_v17 = vrot.slane %v104_v13, 1 }
  0x1d   : > { %v106_v18 = vsel %vm105_vm4, %v103_v12, %v101_v14  ;;  %v107_v19 = vsel %vm105_vm4, %v104_v13, %v102_v15 }
  0x1e   : > { %vm110_vm5 = vcmp.ge.f32.partialorder %v108_v16, %v106_v18  ;;  %v113_v20 = vrot.slane %v108_v16, 1  ;;  %v114_v21 = vrot.slane %v109_v17, 1 }
  0x1f   : > { %v111_v22 = vsel %vm110_vm5, %v108_v16, %v106_v18  ;;  %v112_v23 = vsel %vm110_vm5, %v109_v17, %v107_v19 }
  0x20   : > { %vm115_vm6 = vcmp.ge.f32.partialorder %v113_v20, %v111_v22  ;;  %v118_v24 = vrot.slane %v113_v20, 1  ;;  %v119_v25 = vrot.slane %v114_v21, 1 }
  0x21   : > { %v116_v26 = vsel %vm115_vm6, %v113_v20, %v111_v22  ;;  %v117_v27 = vsel %vm115_vm6, %v114_v21, %v112_v23 }
  0x22   : > { %vm120_vm7 = vcmp.ge.f32.partialorder %v118_v24, %v116_v26  ;;  %v123_v28 = vrot.slane %v118_v24, 1  ;;  %v124_v29 = vrot.slane %v119_v25, 1 }
  0x23   : > { %v121_v30 = vsel %vm120_vm7, %v118_v24, %v116_v26  ;;  %v122_v31 = vsel %vm120_vm7, %v119_v25, %v117_v27 }
  0x24   : > { %vm125_vm8 = vcmp.ge.f32.partialorder %v123_v28, %v121_v30  ;;  %v128_v32 = vrot.slane %v123_v28, 1  ;;  %v129_v33 = vrot.slane %v124_v29, 1 }
  0x25   : > { %v126_v34 = vsel %vm125_vm8, %v123_v28, %v121_v30  ;;  %v127_v35 = vsel %vm125_vm8, %v124_v29, %v122_v31 }
  0x26   : > { %vm130_vm9 = vcmp.ge.f32.partialorder %v128_v32, %v126_v34 }
  0x27   : > { %v132_v36 = vsel %vm130_vm9, %v129_v33, %v127_v35 }
  0x28   : > { %134 = vrot.lane.b32.xlu0 %v132_v36, %s133_s0 }
  0x9a   : > { %v135_v38 = vpop.permute.xlu0 %134 }
  0x9b   : > { %393 = vpush %v135_v38 }
  0xcc   : > { %s394_s20 = spop %393 }
  0xcd   : > { %v141_v42 = vstv %s394_s20  ;;  %s146_s22 = scalar_lea.vmem [#allocation1], %s394_s20  ;;  %s152_s23 = scalar_lea.vmem [#allocation8], %s394_s20 }
  0xce   : > { %v148_v43 = vld [vmem:[%s146_s22] ss:$0 sm:$0xff]  ;;  %v143_v45 = vsel %vm140_vm11, %v141_v42, %v142_v39 }
  0xcf   : > { %v154_v44 = vld [vmem:[%s152_s23] ss:$0 sm:$0xff]  ;;  %149 = vst [vmem:[%s146_s22] sm:$0x1] %v147_v40  ;;  %vm157_vm12 = vcmp.ne.f32.partialorder %v148_v43, 0.0  ;;  %144 = vst [vmem:[#allocation2] sm:$0x1] %v143_v45 }
  0xd0   : > { %155 = vst [vmem:[%s152_s23] sm:$0x1] %v153_v41  ;;  %150 = vst [vmem:[%s145_s19] sm:$0x1] %v148_v43  ;;  %v164_v52 = vsel %vm163_vm10, %v148_v43, 0.0 }
  0xd1   : > { %156 = vst [vmem:[%s151_s21] sm:$0x1] %v154_v44  ;;  %vm158_vm14 = vmand %vm140_vm11, %vm157_vm12 }
  0xd2   : > { %v159_v46 = vsel %vm158_vm14, %v148_v43, 1.0 }
  0xd3   : > { %v172_v47 = vsel %vm171_vm13, %v159_v46, 1.0 }
  0xd4   : > { %519 = vrcp.f32 %v172_v47 }
  0xd6   :  { %v234_v57 = vld [vmem:[#allocation2] sm:$0x1] (%p79_p1) }
  0xd7   : > { %v168_v49 = vld [vmem:[#allocation1] sm:$0xff]  ;;  %236 = vst [vmem:[#allocation3] sm:$0x1] (%p79_p1), %v234_v57 }
  0xd8   :  { %v182_v56 = vld [vmem:[#allocation8] sm:$0xff] (%p79_p1) }
  0xde   : > { %v520_v48 = vpop.eup %519 }
  0xdf   : > { %v174_v50 = vmul.f32 %v520_v48, %v168_v49 }
  0xe1   : > { %v176_v51 = vsel %vm175_vm15, %v174_v50, 0.0 }
  0xe2   : > { %177 = vadd.xlane.f32.xlu0 %v176_v51 }
 0x10f   :  { %198 = vxpose.xlu0.b32.start.end [1/1] (short) (narrow) (%p79_p1), %v182_v56, 8 }
 0x16e   :  { %81 = sbr.rel (!%p79_p1) target bundleno = 12 (0xc), region = 134 }
 0x16f   : > { %v178_v53 = vpop.xlane.xlu0 %177 }
 0x170   : > { %v179_v54 = vmul.f32 %v178_v53, %v164_v52 }
 0x172   : > { %v180_v55 = vsub.f32 %v174_v50, %v179_v54 }
 0x174   : > { %181 = vst [vmem:[#allocation1] sm:$0xff] %v180_v55 }
 0x18f   :  { %v214_v58 = vpop.trf.xlu0 }
 0x190   :  { %230 = vst [vmem:[#allocation5] sm:$0x1] %v214_v58 }
 0x197   :  { %v240_v59 = vld [vmem:[#allocation5] sm:$0x1] }
 0x198   :  { %242 = vst [vmem:[#allocation6] sm:$0x1] %v240_v59 }
 0x199 LB: > { %v290_v60 = vld [vmem:[%s647_s27] sm:$0xff]  ;;  %s292_s27 = scalar_lea.vmem %s647_s27, 8   ;;  %s647_s27 = sphi %s645_s27, %s292_s27   ;;  %s643_s26 = sphi %s641_s26, %s293_s26  }
 0x19a   : > { %291 = vst [vmem:[%s643_s26] sm:$0xff] %v290_v60  ;;  %s293_s26 = scalar_lea.vmem %s643_s26, 8   ;;  %p287_p2 = scmp.gt.s32.totalorder %s292_s27, [#allocation1] }
 0x19b   :  { %s650_s28 = smov (%p287_p2), [#allocation3]   ;;  %s651_s30 = smov (%p287_p2), [#allocation6]  }
 0x19c   :  { %289 = sbr.rel (!%p287_p2) target bundleno = 409 (0x199), region = 156  ;;  %s310_s29 = sshll.u32 (%p287_p2), %s650_s28, 4  ;;  %s311_s29 = int_to_ptr.vmem [resolvable:$true] %s310_s29 }
 0x19d   :  { %s319_s4 = sshll.u32 (%p287_p2), %s651_s30, 4  ;;  %s521_s1 = scalar_lea.vmem (%p287_p2), %s311_s29, 16  ;;  %s320_s4 = int_to_ptr.vmem [resolvable:$true] %s319_s4 }
 0x19e   :  { %p522_p3 = scmp.ne.s32.totalorder (%p287_p2), %s311_s29, %s521_s1  ;;  %s525_s5 = scalar_lea.vmem (%p287_p2), %s311_s29, 32 }
 0x19f   :  { %p526_p4 = scmp.lt.s32.totalorder (%p287_p2), %s311_s29, %s311_s29  ;;  %p527_p5 = scmp.lt.s32.totalorder (%p287_p2), %s525_s5, %s521_s1 }
 0x1a1   :  { %p528_p6 = por (%p287_p2), %p527_p5, %p526_p4 }
 0x1a3   :  { %p529_p7 = pnand %p528_p6, %p522_p3 }
 0x1a5   :  { %532 = shalt.err (!%p529_p7)
}
 0x1a6   :  { %s533_s8 = scalar_lea.hbm %s742_s2, 16 }
 0x1a7   :  { %p534_p8 = scmp.ne.s32.totalorder %s742_s2, %s533_s8  ;;  %p537_p9 = scmp.lt.u32.totalorder %s533_s8, %s742_s2 }
 0x1a9   :  { %p539_p10 = pnand %p537_p9, %p534_p8 }
 0x1ab   :  { %542 = shalt.err (!%p539_p10)
}
 0x1ac   :  { %313 = dma.vmem_to_hbm [thread:$0]  %s311_s29, 16, %s742_s2, [#allocation4]  }
 0x1ad   :  { %s543_s15 = scalar_lea.vmem %s320_s4, 16  ;;  %s547_s16 = scalar_lea.vmem %s320_s4, 32 }
 0x1ae   :  { %p544_p11 = scmp.ne.s32.totalorder %s320_s4, %s543_s15  ;;  %p548_p12 = scmp.lt.s32.totalorder %s320_s4, %s320_s4 }
 0x1af   :  { %p549_p13 = scmp.lt.s32.totalorder %s547_s16, %s543_s15 }
 0x1b1   :  { %p550_p0 = por %p549_p13, %p548_p12 }
 0x1b3   :  { %p551_p1 = pnand %p550_p0, %p544_p11 }
 0x1b5   :  { %554 = shalt.err (!%p551_p1)
}
 0x1b6   :  { %s555_s0 = scalar_lea.hbm %s743_s3, 16 }
 0x1b7   :  { %p556_p2 = scmp.ne.s32.totalorder %s743_s3, %s555_s0  ;;  %p559_p3 = scmp.lt.u32.totalorder %s555_s0, %s743_s3 }
 0x1b9   :  { %p561_p4 = pnand %p559_p3, %p556_p2 }
 0x1bb   :  { %564 = shalt.err (!%p561_p4)
}
 0x1bc   :  { %322 = dma.vmem_to_hbm [thread:$0]  %s320_s4, 16, %s743_s3, [#allocation7]  }
 0x1bd   :  { %625 = dma.done.wait [#allocation4], 16  }
 0x1be   :  { %626 = vsyncadd [#allocation4], 4294967280 }
 0x1bf   :  { %627 = dma.done.wait [#allocation7], 16  }
 0x1c0   :  { %628 = vsyncadd [#allocation7], 4294967280 }
 0x1c1   :  { %329 = vsyncpa [#allocation4], 1 }
 0x1c2   :  { %330 = vsyncpa [#allocation7], 1 }

// kernel: flow_model_forward.1
= control target key start
LH: loop header
LB: loop body
LE: loop exit
PB: predicated region body
PF: predicated region fallthrough
CT: control target
= control target key end

     0   :  { %vm73_vm0 = vcmask 1043456   ;;  %v2898_v4 = vmov 0   ;;  %vm69_vm1 = vcmask 64512   ;;  %s3447_s0 = inlined_call_operand.vmem [shape: f32[8,256], index: 0, kind: input, shape index: {}]   ;;  %s3448_s1 = inlined_call_operand.vmem [shape: f32[2,1,256], index: 1, kind: input, shape index: {}]   ;;  %s3449_s2 = inlined_call_operand.vmem [shape: f32[2,1,256], index: 2, kind: input, shape index: {}]   ;;  %s3450_s3 = inlined_call_operand.vmem [shape: f32[2,8,8], index: 3, kind: input, shape index: {}]   ;;  %s3451_s4 = inlined_call_operand.vmem [shape: bf16[2,16,8], index: 4, kind: input, shape index: {}]   ;;  %s3452_s5 = inlined_call_operand.vmem [shape: f32[2,16,1], index: 5, kind: input, shape index: {}]   ;;  %s3453_s6 = inlined_call_operand.vmem [shape: bf16[4,32,48], index: 6, kind: input, shape index: {}]   ;;  %s3454_s7 = inlined_call_operand.vmem [shape: bf16[4,32,16], index: 7, kind: input, shape index: {}]   ;;  %s3455_s8 = inlined_call_operand.vmem [shape: bf16[2,4,16], index: 8, kind: input, shape index: {}]   ;;  %s3456_s9 = inlined_call_operand.vmem [shape: f32[2,4,1], index: 9, kind: input, shape index: {}]   ;;  %s3457_s10 = inlined_call_operand.vmem [shape: bf16[2,8,4], index: 10, kind: input, shape index: {}]   ;;  %s3458_s11 = inlined_call_operand.vmem [shape: f32[2,8,1], index: 11, kind: input, shape index: {}]   ;;  %s3459_s12 = inlined_call_operand.hbm [shape: f32[8,256], index: 12, kind: output, shape index: {0}]   ;;  %s3460_s13 = inlined_call_operand.vmem [shape: f32[1,256], index: 13, kind: output, shape index: {1}]  }
   0x1   :  { %v2979_v0 = vld [vmem:[%s3447_s0 + $0x8] sm:$0xff]  ;;  %v2984_v1 = vld [vmem:[%s3447_s0] sm:$0xff]  ;;  %112 = vmatprep.mubr.bf16.mxu1 %v2898_v4  ;;  %2662 = vset.pattern.permute.xlu0 %v2898_v4 }
   0x2   :  { %v48_v2 = vpack.c.bf16 %v2979_v0, %v2979_v0  ;;  %v47_v3 = vpack.c.bf16 %v2984_v1, %v2984_v1  ;;  %v52_v5 = vld [vmem:[%s3452_s5] sm:$0xff]  ;;  %350 = vmatprep.mubr.bf16.mxu0 %v2898_v4  ;;  %2663 = vset.pattern.permute.xlu1 %v2898_v4  ;;  %v53_v8 = vld [vmem:[%s3452_s5 + $0x8] sm:$0xff] }
   0x3   :  { %v2664_v7 = vld [vmem:[%s3451_s4] sm:$0xff]   ;;  %56 = vperm.xlu0 %2662, %v52_v5  }
   0x4   :  { %2524 = vmatprep.subr.msk.bf16.mxu1 %vm73_vm0, %v48_v2  ;;  %v75_v6 = vsel %vm73_vm0, %v47_v3, 0 }
   0x5   :  { %81 = vmatpush1.bf16.msra.mxu1 %v75_v6 }
   0x7   :  { %61 = vperm.xlu0 %2662, %v53_v8  }
   0x8   :  { %2525 = vmatmul.mubr.msk.bf16.vlgmr.msra.gmra.mrb[0].mxu1 %vm69_vm1, %v2664_v7 }
   0x9   :  { %242 = vmatprep.mubr.bf16.mxu1 %v2898_v4 }
   0xa   :  { %19 = vsyncpa [#allocation3], 0  ;;  %s2899_s17 = smov 2   ;;  %s2900_s18 = smov 126   ;;  %v131_v19 = vlaneseq  ;;  %v138_v26 = vld [vmem:[%s3448_s1] sm:$0x3] }
   0xb   :  { %v167_v40 = vld [vmem:[%s3449_s2] sm:$0x3]  ;;  %vm203_vm4 = vcmask 392192   ;;  %v2666_v61 = vld [vmem:[%s3453_s6 + $0x8] sm:$0xff]   ;;  %vm311_vm5 = vcmask 130048   ;;  %s2901_s0 = smov 4  }
   0xc   :  { %v3032_v20 = vshrl.u32 %v131_v19, 7  ;;  %v3035_v22 = vand.u32 127, %v131_v19  ;;  %v2665_v60 = vld [vmem:[%s3453_s6] sm:$0xff]   ;;  %s2902_s14 = smov 124   ;;  %vm767_vm8 = vcmask 1041408   ;;  %vm763_vm9 = vcmask 31744  }
   0xd   :  { %s2904_s24 = smov [#allocation2]  }
   0xe   :  { %v3038_v24 = vsub.s32 0, %v3032_v20  ;;  %v3041_v25 = vsub.s32 1, %v3032_v20  ;;  %vm133_vm2 = vcmp.lt.s32.totalorder %v3035_v22, 2  ;;  %vm162_vm3 = vcmp.lt.s32.totalorder %v3035_v22, 126  ;;  %s2511_s25 = sshll.u32 %s2904_s24, 4  ;;  %s2512_s25 = int_to_ptr.vmem [resolvable:$true] %s2511_s25 }
   0xf   :  { %vm419_vm6 = vcmp.lt.s32.totalorder %v3035_v22, 4  ;;  %vm449_vm7 = vcmp.lt.s32.totalorder %v3035_v22, 124  ;;  %v2679_v22 = vld [vmem:[%s3453_s6 + $0x38] sm:$0xff]   ;;  %p2879_p1 = scmp.lt.s32.totalorder %s2512_s25, %s2512_s25 }
  0x10   :  { %v3048_v28 = vrot.slane %v138_v26, %v3038_v24  ;;  %v3051_v29 = vrot.slane %v138_v26, %v3041_v25  ;;  %v3070_v45 = vrot.slane %v167_v40, %v3038_v24  ;;  %v3073_v46 = vrot.slane %v167_v40, %v3041_v25 }
  0x82   :  { %v57_v9 = vpop.permute.xlu0 %56 }
  0x86   :  { %v62_v16 = vpop.permute.xlu0 %61 }
  0xdb   :  { %v114_v10 = vpop.f32.mrb[0].mxu1 }
  0xdc   :  { %v3007_v11 = vadd.f32 %v114_v10, %v57_v9  ;;  %v116_v12 = vpop.f32.mrb[1].mxu1 }
  0xdd   :  { %v3009_v13 = vadd.f32 %v116_v12, %v57_v9  ;;  %v118_v14 = vpop.f32.mrb[2].mxu1 }
  0xde   :  { %v120_v15 = vpop.f32.mrb[3].mxu1  ;;  %123 = vrot.lane.b32.xlu1 %v3007_v11, %s2899_s17  ;;  %v3015_v17 = vadd.f32 %v118_v14, %v62_v16 }
  0xdf   :  { %127 = vrot.lane.b32.xlu0 %v3009_v13, %s2899_s17  ;;  %v3021_v18 = vadd.f32 %v120_v15, %v62_v16 }
  0xe0   :  { %v185_v53 = vpack.c.bf16 %v3015_v17, %v3007_v11 }
  0xe1   :  { %v186_v47 = vpack.c.bf16 %v3021_v18, %v3009_v13 }
  0xe2   :  { %125 = vrot.lane.b32.xlu1 %v3015_v17, %s2899_s17 }
  0xe3   :  { %154 = vrot.lane.b32.xlu0 %v3007_v11, %s2900_s18 }
  0xe6   :  { %129 = vrot.lane.b32.xlu1 %v3021_v18, %s2899_s17 }
  0xe7   :  { %158 = vrot.lane.b32.xlu0 %v3009_v13, %s2900_s18 }
  0xea   :  { %156 = vrot.lane.b32.xlu1 %v3015_v17, %s2900_s18 }
  0xee   :  { %160 = vrot.lane.b32.xlu1 %v3021_v18, %s2900_s18 }
 0x150   :  { %v124_v21 = vpop.permute.xlu1 %123 }
 0x151   :  { %v128_v23 = vpop.permute.xlu0 %127 }
 0x152   :  { %v134_v31 = vsel %vm133_vm2, %v124_v21, %v128_v23  ;;  %v136_v32 = vsel %vm133_vm2, %v128_v23, %v124_v21 }
 0x153   :  { %v150_v36 = vmul.f32 %v3048_v28, %v136_v32  ;;  %v151_v37 = vmul.f32 %v3051_v29, %v134_v31 }
 0x154   :  { %v126_v27 = vpop.permute.xlu1 %125 }
 0x155   :  { %v155_v30 = vpop.permute.xlu0 %154 }
 0x158   :  { %v130_v33 = vpop.permute.xlu1 %129 }
 0x159   :  { %v135_v34 = vsel %vm133_vm2, %v126_v27, %v130_v33  ;;  %v137_v35 = vsel %vm133_vm2, %v130_v33, %v126_v27  ;;  %v159_v42 = vpop.permute.xlu0 %158 }
 0x15a   :  { %v152_v38 = vmul.f32 %v3048_v28, %v137_v35  ;;  %v153_v39 = vmul.f32 %v3051_v29, %v135_v34  ;;  %v163_v48 = vsel %vm162_vm3, %v155_v30, %v159_v42  ;;  %v165_v49 = vsel %vm162_vm3, %v159_v42, %v155_v30 }
 0x15b   :  { %v179_v54 = vmul.f32 %v3070_v45, %v163_v48  ;;  %v180_v55 = vmul.f32 %v3073_v46, %v165_v49  ;;  %v2667_v48 = vld [vmem:[%s3454_s7] sm:$0xff]   ;;  %v2668_v49 = vld [vmem:[%s3454_s7 + $0x8] sm:$0xff]  }
 0x15c   :  { %v183_v41 = vpack.c.bf16 %v152_v38, %v150_v36  ;;  %v157_v43 = vpop.permute.xlu1 %156  ;;  %v184_v44 = vpack.c.bf16 %v153_v39, %v151_v37 }
 0x15e   :  { %210 = vmatprep.subr.bf16.mxu1 %v184_v44 }
 0x15f   :  { %211 = vmatpush1.bf16.msra.mxu1 %v183_v41 }
 0x160   :  { %212 = vmatprep.subr.bf16.mxu1 %v186_v47  ;;  %v161_v50 = vpop.permute.xlu1 %160 }
 0x161   :  { %v164_v51 = vsel %vm162_vm3, %v157_v43, %v161_v50  ;;  %v166_v52 = vsel %vm162_vm3, %v161_v50, %v157_v43 }
 0x162   :  { %v181_v56 = vmul.f32 %v3070_v45, %v164_v51  ;;  %v182_v57 = vmul.f32 %v3073_v46, %v166_v52 }
 0x163   :  { %213 = vmatpush1.bf16.msra.mxu1 %v185_v53 }
 0x164   :  { %v187_v58 = vpack.c.bf16 %v181_v56, %v179_v54  ;;  %v188_v59 = vpack.c.bf16 %v182_v57, %v180_v55 }
 0x166   :  { %214 = vmatprep.subr.bf16.mxu1 %v188_v59 }
 0x167   :  { %215 = vmatpush1.bf16.msra.mxu1 %v187_v58 }
 0x16a   :  { %2528 = vmatmul.mubr.msk.bf16.vlgmr.msra.gmra.mrb[4].mxu1 %vm203_vm4, %v2665_v60 }
 0x16b   :  { %252 = vmatprep.mubr.bf16.mxu1 %v2898_v4 }
 0x172   :  { %2529 = vmatmul.mubr.msk.bf16.gmra.mrb[8].mxu1 %vm203_vm4, %v2666_v61 }
 0x173   :  { %638 = vmatprep.mubr.bf16.mxu1 %v2898_v4 }
 0x23d   :  { %v244_v62 = vpop.f32.mrb[4].mxu1 }
 0x23e   :  { %v246_v63 = vpop.f32.mrb[5].mxu1 }
 0x23f   :  { %v248_v2 = vpop.f32.mrb[6].mxu1 }
 0x240   :  { %v250_v3 = vpop.f32.mrb[7].mxu1 }
 0x245   :  { %v254_v5 = vpop.f32.mrb[8].mxu1 }
 0x246   :  { %v2530_v6 = vmul.f32 -1.442695, %v254_v5  ;;  %v256_v7 = vpop.f32.mrb[9].mxu1 }
 0x247   :  { %v2531_v8 = vmul.f32 -1.442695, %v256_v7  ;;  %v258_v9 = vpop.f32.mrb[10].mxu1 }
 0x248   :  { %2682 = vpow2.f32 %v2530_v6  ;;  %v2532_v10 = vmul.f32 -1.442695, %v258_v9  ;;  %v260_v12 = vpop.f32.mrb[11].mxu1 }
 0x249   :  { %2684 = vpow2.f32 %v2531_v8  ;;  %v2533_v14 = vmul.f32 -1.442695, %v260_v12 }
 0x24a   :  { %2686 = vpow2.f32 %v2532_v10 }
 0x24b   :  { %2688 = vpow2.f32 %v2533_v14 }
 0x24c   :  { %2690 = vtanh.f32 %v244_v62 }
 0x24d   :  { %2692 = vtanh.f32 %v246_v63 }
 0x24e   :  { %2694 = vtanh.f32 %v248_v2 }
 0x24f   :  { %2696 = vtanh.f32 %v250_v3 }
 0x252   :  { %v2683_v15 = vpop.eup %2682 }
 0x253   :  { %v2685_v16 = vpop.eup %2684  ;;  %v279_v21 = vadd.f32 1.0, %v2683_v15 }
 0x254   :  { %v2687_v23 = vpop.eup %2686  ;;  %v280_v26 = vadd.f32 1.0, %v2685_v16 }
 0x255   :  { %v2689_v27 = vpop.eup %2688  ;;  %2698 = vrcp.f32 %v279_v21  ;;  %v281_v30 = vadd.f32 1.0, %v2687_v23 }
 0x256   :  { %2700 = vrcp.f32 %v280_v26  ;;  %v282_v31 = vadd.f32 1.0, %v2689_v27  ;;  %v2691_v32 = vpop.eup %2690 }
 0x257   :  { %2702 = vrcp.f32 %v281_v30  ;;  %v2693_v33 = vpop.eup %2692 }
 0x258   :  { %2704 = vrcp.f32 %v282_v31  ;;  %v2695_v34 = vpop.eup %2694 }
 0x259   :  { %v2697_v35 = vpop.eup %2696 }
 0x25f   :  { %v2699_v36 = vpop.eup %2698 }
 0x260   :  { %v2701_v37 = vpop.eup %2700  ;;  %v291_v38 = vmul.f32 %v2699_v36, %v2691_v32 }
 0x261   :  { %v2703_v39 = vpop.eup %2702  ;;  %v292_v40 = vmul.f32 %v2701_v37, %v2693_v33  ;;  %v2542_v37 = vld [vmem:[%s3448_s1 + $0x2] sm:$0x3] }
 0x262   :  { %v2705_v41 = vpop.eup %2704  ;;  %v293_v42 = vmul.f32 %v2703_v39, %v2695_v34  ;;  %v3146_v39 = vrot.slane %v2542_v37, %v3038_v24 }
 0x263   :  { %v294_v43 = vmul.f32 %v2705_v41, %v2697_v35 }
 0x264   :  { %v299_v44 = vpack.c.bf16 %v293_v42, %v291_v38 }
 0x265   :  { %v300_v47 = vpack.c.bf16 %v294_v43, %v292_v40  ;;  %v3149_v40 = vrot.slane %v2542_v37, %v3041_v25 }
 0x267   :  { %318 = vmatprep.subr.bf16.mxu0 %v300_v47 }
 0x268   :  { %319 = vmatpush1.bf16.msra.mxu0 %v299_v44 }
 0x26b   :  { %2536 = vmatmul.mubr.msk.bf16.vlgmr.msra.gmra.mrb[0].mxu0 %vm311_vm5, %v2667_v48 }
 0x26c   :  { %360 = vmatprep.mubr.bf16.mxu0 %v2898_v4 }
 0x273   :  { %2537 = vmatmul.mubr.msk.bf16.gmra.mrb[4].mxu0 %vm311_vm5, %v2668_v49 }
 0x274   :  { %530 = vmatprep.mubr.bf16.mxu0 %v2898_v4 }
 0x33e   :  { %v352_v50 = vpop.f32.mrb[0].mxu0 }
 0x33f   :  { %v354_v51 = vpop.f32.mrb[1].mxu0 }
 0x340   :  { %v356_v52 = vpop.f32.mrb[2].mxu0 }
 0x341   :  { %v358_v53 = vpop.f32.mrb[3].mxu0 }
 0x346   :  { %v362_v54 = vpop.f32.mrb[4].mxu0 }
 0x347   :  { %v2538_v55 = vmul.f32 -1.442695, %v362_v54  ;;  %v364_v56 = vpop.f32.mrb[5].mxu0  ;;  %v2543_v54 = vld [vmem:[%s3449_s2 + $0x2] sm:$0x3] }
 0x348   :  { %v2539_v57 = vmul.f32 -1.442695, %v364_v56  ;;  %v366_v58 = vpop.f32.mrb[6].mxu0 }
 0x349   :  { %2706 = vpow2.f32 %v2538_v55  ;;  %v2540_v59 = vmul.f32 -1.442695, %v366_v58  ;;  %v368_v60 = vpop.f32.mrb[7].mxu0  ;;  %v3168_v58 = vrot.slane %v2543_v54, %v3038_v24 }
 0x34a   :  { %2708 = vpow2.f32 %v2539_v57  ;;  %v2541_v61 = vmul.f32 -1.442695, %v368_v60 }
 0x34b   :  { %2710 = vpow2.f32 %v2540_v59  ;;  %v3171_v59 = vrot.slane %v2543_v54, %v3041_v25 }
 0x34c   :  { %2712 = vpow2.f32 %v2541_v61 }
 0x34d   :  { %2714 = vtanh.f32 %v352_v50 }
 0x34e   :  { %2716 = vtanh.f32 %v354_v51 }
 0x34f   :  { %2718 = vtanh.f32 %v356_v52 }
 0x350   :  { %2720 = vtanh.f32 %v358_v53 }
 0x353   :  { %v2707_v62 = vpop.eup %2706 }
 0x354   :  { %v2709_v63 = vpop.eup %2708  ;;  %v387_v2 = vadd.f32 1.0, %v2707_v62 }
 0x355   :  { %v2711_v3 = vpop.eup %2710  ;;  %v388_v5 = vadd.f32 1.0, %v2709_v63 }
 0x356   :  { %v2713_v6 = vpop.eup %2712  ;;  %2722 = vrcp.f32 %v387_v2  ;;  %v389_v7 = vadd.f32 1.0, %v2711_v3 }
 0x357   :  { %2724 = vrcp.f32 %v388_v5  ;;  %v390_v8 = vadd.f32 1.0, %v2713_v6  ;;  %v2715_v9 = vpop.eup %2714 }
 0x358   :  { %2726 = vrcp.f32 %v389_v7  ;;  %v2717_v10 = vpop.eup %2716 }
 0x359   :  { %2728 = vrcp.f32 %v390_v8  ;;  %v2719_v12 = vpop.eup %2718 }
 0x35a   :  { %v2721_v14 = vpop.eup %2720 }
 0x360   :  { %v2723_v15 = vpop.eup %2722 }
 0x361   :  { %v2725_v16 = vpop.eup %2724  ;;  %v3111_v21 = vmul.f32 %v2723_v15, %v2715_v9  ;;  %v2669_v9 = vld [vmem:[%s3453_s6 + $0x10] sm:$0xff]  }
 0x362   :  { %v2727_v23 = vpop.eup %2726  ;;  %v3113_v26 = vmul.f32 %v2725_v16, %v2717_v10  ;;  %v2670_v10 = vld [vmem:[%s3453_s6 + $0x18] sm:$0xff]  }
 0x363   :  { %v2729_v27 = vpop.eup %2728  ;;  %v407_v30 = vadd.f32 %v3111_v21, %v3007_v11  ;;  %v3117_v31 = vmul.f32 %v2727_v23, %v2719_v12 }
 0x364   :  { %v3119_v32 = vmul.f32 %v2729_v27, %v2721_v14  ;;  %v408_v34 = vadd.f32 %v3113_v26, %v3009_v13  ;;  %v702_v13 = vld [vmem:[%s3456_s9] sm:$0xf] }
 0x365   :  { %411 = vrot.lane.b32.xlu0 %v407_v30, %s2901_s0  ;;  %v409_v33 = vadd.f32 %v3117_v31, %v3015_v17  ;;  %v2574_v17 = vld [vmem:[%s3452_s5 + $0x10] sm:$0xff] }
 0x366   :  { %v410_v35 = vadd.f32 %v3119_v32, %v3021_v18 }
 0x367   :  { %413 = vrot.lane.b32.xlu1 %v409_v33, %s2901_s0  ;;  %v473_v36 = vpack.c.bf16 %v409_v33, %v407_v30 }
 0x368   :  { %v474_v11 = vpack.c.bf16 %v410_v35, %v408_v34 }
 0x369   :  { %415 = vrot.lane.b32.xlu0 %v408_v34, %s2901_s0 }
 0x36b   :  { %417 = vrot.lane.b32.xlu1 %v410_v35, %s2901_s0 }
 0x36d   :  { %441 = vrot.lane.b32.xlu0 %v407_v30, %s2902_s14 }
 0x36f   :  { %443 = vrot.lane.b32.xlu1 %v409_v33, %s2902_s14 }
 0x371   :  { %445 = vrot.lane.b32.xlu0 %v408_v34, %s2902_s14 }
 0x373   :  { %447 = vrot.lane.b32.xlu1 %v410_v35, %s2902_s14 }
 0x375   :  { %705 = vperm.xlu0 %2662, %v702_v13  }
 0x379   :  { %1295 = vperm.xlu0 %2662, %v2574_v17  }
 0x3d7   :  { %v412_v18 = vpop.permute.xlu0 %411 }
 0x3d9   :  { %v414_v38 = vpop.permute.xlu1 %413 }
 0x3db   :  { %v416_v41 = vpop.permute.xlu0 %415 }
 0x3dc   :  { %v420_v42 = vsel %vm419_vm6, %v412_v18, %v416_v41  ;;  %v422_v43 = vsel %vm419_vm6, %v416_v41, %v412_v18 }
 0x3dd   :  { %v418_v44 = vpop.permute.xlu1 %417  ;;  %v437_v49 = vmul.f32 %v3146_v39, %v422_v43  ;;  %v438_v50 = vmul.f32 %v3149_v40, %v420_v42 }
 0x3de   :  { %v421_v47 = vsel %vm419_vm6, %v414_v38, %v418_v44  ;;  %v423_v48 = vsel %vm419_vm6, %v418_v44, %v414_v38 }
 0x3df   :  { %v439_v51 = vmul.f32 %v3146_v39, %v423_v48  ;;  %v440_v52 = vmul.f32 %v3149_v40, %v421_v47  ;;  %v442_v53 = vpop.permute.xlu0 %441 }
 0x3e1   :  { %v471_v55 = vpack.c.bf16 %v439_v51, %v437_v49  ;;  %v444_v56 = vpop.permute.xlu1 %443  ;;  %v472_v57 = vpack.c.bf16 %v440_v52, %v438_v50 }
 0x3e3   :  { %v446_v60 = vpop.permute.xlu0 %445  ;;  %498 = vmatprep.subr.bf16.mxu0 %v472_v57 }
 0x3e4   :  { %v450_v61 = vsel %vm449_vm7, %v442_v53, %v446_v60  ;;  %v452_v62 = vsel %vm449_vm7, %v446_v60, %v442_v53  ;;  %499 = vmatpush1.bf16.msra.mxu0 %v471_v55 }
 0x3e5   :  { %v448_v63 = vpop.permute.xlu1 %447  ;;  %500 = vmatprep.subr.bf16.mxu0 %v474_v11  ;;  %v467_v25 = vmul.f32 %v3168_v58, %v450_v61  ;;  %v468_v3 = vmul.f32 %v3171_v59, %v452_v62  ;;  %v2671_v62 = vld [vmem:[%s3454_s7 + $0x10] sm:$0xff]  }
 0x3e6   :  { %v451_v2 = vsel %vm449_vm7, %v444_v56, %v448_v63  ;;  %v453_v24 = vsel %vm449_vm7, %v448_v63, %v444_v56  ;;  %v2672_v63 = vld [vmem:[%s3454_s7 + $0x18] sm:$0xff]  }
 0x3e7   :  { %v469_v5 = vmul.f32 %v3168_v58, %v451_v2  ;;  %v470_v6 = vmul.f32 %v3171_v59, %v453_v24 }
 0x3e8   :  { %501 = vmatpush1.bf16.msra.mxu0 %v473_v36 }
 0x3e9   :  { %v475_v7 = vpack.c.bf16 %v469_v5, %v467_v25  ;;  %v476_v8 = vpack.c.bf16 %v470_v6, %v468_v3 }
 0x3eb   :  { %502 = vmatprep.subr.bf16.mxu0 %v476_v8 }
 0x3ec   :  { %503 = vmatpush1.bf16.msra.mxu0 %v475_v7 }
 0x3ef   :  { %2550 = vmatmul.mubr.msk.bf16.vlgmr.msra.gmra.mrb[8].mxu0 %vm203_vm4, %v2669_v9 }
 0x3f0   :  { %540 = vmatprep.mubr.bf16.mxu0 %v2898_v4 }
 0x3f7   :  { %2551 = vmatmul.mubr.msk.bf16.gmra.mrb[12].mxu0 %vm203_vm4, %v2670_v10 }
 0x3f8   :  { %743 = vmatprep.mubr.bf16.mxu0 %v2898_v4 }
 0x4c2   :  { %v532_v12 = vpop.f32.mrb[8].mxu0 }
 0x4c3   :  { %v534_v14 = vpop.f32.mrb[9].mxu0 }
 0x4c4   :  { %v536_v15 = vpop.f32.mrb[10].mxu0 }
 0x4c5   :  { %v538_v16 = vpop.f32.mrb[11].mxu0 }
 0x4ca   :  { %v542_v23 = vpop.f32.mrb[12].mxu0 }
 0x4cb   :  { %v2552_v27 = vmul.f32 -1.442695, %v542_v23  ;;  %v544_v30 = vpop.f32.mrb[13].mxu0 }
 0x4cc   :  { %v2553_v33 = vmul.f32 -1.442695, %v544_v30  ;;  %v546_v34 = vpop.f32.mrb[14].mxu0 }
 0x4cd   :  { %2730 = vpow2.f32 %v2552_v27  ;;  %v2554_v35 = vmul.f32 -1.442695, %v546_v34  ;;  %v548_v36 = vpop.f32.mrb[15].mxu0 }
 0x4ce   :  { %2732 = vpow2.f32 %v2553_v33  ;;  %v2555_v11 = vmul.f32 -1.442695, %v548_v36 }
 0x4cf   :  { %2734 = vpow2.f32 %v2554_v35 }
 0x4d0   :  { %2736 = vpow2.f32 %v2555_v11 }
 0x4d1   :  { %2738 = vtanh.f32 %v532_v12 }
 0x4d2   :  { %2740 = vtanh.f32 %v534_v14 }
 0x4d3   :  { %2742 = vtanh.f32 %v536_v15 }
 0x4d4   :  { %2744 = vtanh.f32 %v538_v16 }
 0x4d7   :  { %v2731_v13 = vpop.eup %2730 }
 0x4d8   :  { %v2733_v17 = vpop.eup %2732  ;;  %v567_v18 = vadd.f32 1.0, %v2731_v13 }
 0x4d9   :  { %v2735_v37 = vpop.eup %2734  ;;  %v568_v38 = vadd.f32 1.0, %v2733_v17 }
 0x4da   :  { %v2737_v41 = vpop.eup %2736  ;;  %2746 = vrcp.f32 %v567_v18  ;;  %v569_v42 = vadd.f32 1.0, %v2735_v37 }
 0x4db   :  { %2748 = vrcp.f32 %v568_v38  ;;  %v570_v43 = vadd.f32 1.0, %v2737_v41  ;;  %v2739_v44 = vpop.eup %2738 }
 0x4dc   :  { %2750 = vrcp.f32 %v569_v42  ;;  %v2741_v47 = vpop.eup %2740 }
 0x4dd   :  { %2752 = vrcp.f32 %v570_v43  ;;  %v2743_v48 = vpop.eup %2742 }
 0x4de   :  { %v2745_v49 = vpop.eup %2744 }
 0x4e4   :  { %v2747_v50 = vpop.eup %2746 }
 0x4e5   :  { %v2749_v51 = vpop.eup %2748  ;;  %v579_v52 = vmul.f32 %v2747_v50, %v2739_v44 }
 0x4e6   :  { %v2751_v53 = vpop.eup %2750  ;;  %v580_v54 = vmul.f32 %v2749_v51, %v2741_v47 }
 0x4e7   :  { %v2753_v55 = vpop.eup %2752  ;;  %v581_v56 = vmul.f32 %v2751_v53, %v2743_v48 }
 0x4e8   :  { %v582_v57 = vmul.f32 %v2753_v55, %v2745_v49 }
 0x4e9   :  { %v588_v60 = vpack.c.bf16 %v581_v56, %v579_v52 }
 0x4ea   :  { %v589_v61 = vpack.c.bf16 %v582_v57, %v580_v54 }
 0x4ec   :  { %606 = vmatprep.subr.bf16.mxu1 %v589_v61 }
 0x4ed   :  { %607 = vmatpush1.bf16.msra.mxu1 %v588_v60  ;;  %v699_v60 = vld [vmem:[%s3455_s8] sm:$0x3] }
 0x4f0   :  { %2562 = vmatmul.mubr.msk.bf16.vlgmr.msra.gmra.mrb[12].mxu1 %vm311_vm5, %v2671_v62 }
 0x4f1   :  { %648 = vmatprep.mubr.bf16.mxu1 %v2898_v4 }
 0x4f8   :  { %2563 = vmatmul.mubr.msk.bf16.gmra.mrb[16].mxu1 %vm311_vm5, %v2672_v63 }
 0x4f9   :  { %806 = vmatprep.mubr.bf16.mxu1 %v2898_v4 }
 0x5c3   :  { %v640_v2 = vpop.f32.mrb[12].mxu1 }
 0x5c4   :  { %v642_v24 = vpop.f32.mrb[13].mxu1 }
 0x5c5   :  { %v644_v25 = vpop.f32.mrb[14].mxu1 }
 0x5c6   :  { %v646_v3 = vpop.f32.mrb[15].mxu1 }
 0x5cb   :  { %v650_v5 = vpop.f32.mrb[16].mxu1 }
 0x5cc   :  { %v2564_v6 = vmul.f32 -1.442695, %v650_v5  ;;  %v652_v7 = vpop.f32.mrb[17].mxu1 }
 0x5cd   :  { %v2565_v8 = vmul.f32 -1.442695, %v652_v7  ;;  %v654_v9 = vpop.f32.mrb[18].mxu1 }
 0x5ce   :  { %2754 = vpow2.f32 %v2564_v6  ;;  %v2566_v10 = vmul.f32 -1.442695, %v654_v9  ;;  %v656_v12 = vpop.f32.mrb[19].mxu1 }
 0x5cf   :  { %2756 = vpow2.f32 %v2565_v8  ;;  %v2567_v14 = vmul.f32 -1.442695, %v656_v12 }
 0x5d0   :  { %2758 = vpow2.f32 %v2566_v10 }
 0x5d1   :  { %2760 = vpow2.f32 %v2567_v14 }
 0x5d2   :  { %2762 = vtanh.f32 %v640_v2  ;;  %v706_v2 = vpop.permute.xlu0 %705 }
 0x5d3   :  { %2764 = vtanh.f32 %v642_v24 }
 0x5d4   :  { %2766 = vtanh.f32 %v644_v25  ;;  %v820_v25 = vand.u32 4294901760, %v2984_v1 }
 0x5d5   :  { %2768 = vtanh.f32 %v646_v3 }
 0x5d8   :  { %v2755_v15 = vpop.eup %2754 }
 0x5d9   :  { %v2757_v16 = vpop.eup %2756  ;;  %v675_v23 = vadd.f32 1.0, %v2755_v15  ;;  %v903_v15 = vsub.f32 %v2984_v1, %v820_v25 }
 0x5da   :  { %v2759_v27 = vpop.eup %2758  ;;  %v676_v30 = vadd.f32 1.0, %v2757_v16 }
 0x5db   :  { %v2761_v33 = vpop.eup %2760  ;;  %2770 = vrcp.f32 %v675_v23  ;;  %v677_v34 = vadd.f32 1.0, %v2759_v27 }
 0x5dc   :  { %2772 = vrcp.f32 %v676_v30  ;;  %v678_v35 = vadd.f32 1.0, %v2761_v33  ;;  %v2763_v36 = vpop.eup %2762  ;;  %v754_v33 = vld [vmem:[%s3457_s10] sm:$0xf] }
 0x5dd   :  { %2774 = vrcp.f32 %v677_v34  ;;  %v2765_v11 = vpop.eup %2764  ;;  %v904_v34 = vand.u32 4294901760, %v903_v15 }
 0x5de   :  { %2776 = vrcp.f32 %v678_v35  ;;  %v2767_v13 = vpop.eup %2766 }
 0x5df   :  { %v2769_v17 = vpop.eup %2768 }
 0x5e5   :  { %v2771_v18 = vpop.eup %2770 }
 0x5e6   :  { %v2773_v37 = vpop.eup %2772  ;;  %v687_v38 = vmul.f32 %v2771_v18, %v2763_v36  ;;  %v2903_v36 = vmov 0.0  }
 0x5e7   :  { %v2775_v41 = vpop.eup %2774  ;;  %v688_v42 = vmul.f32 %v2773_v37, %v2765_v11  ;;  %v905_v11 = vsub.f32 %v903_v15, %v904_v34 }
 0x5e8   :  { %v2777_v43 = vpop.eup %2776  ;;  %v689_v44 = vmul.f32 %v2775_v41, %v2767_v13  ;;  %v691_v47 = vadd.f32 %v687_v38, %v3111_v21  ;;  %v757_v21 = vld [vmem:[%s3458_s11] sm:$0xff] }
 0x5e9   :  { %v690_v48 = vmul.f32 %v2777_v43, %v2769_v17  ;;  %v692_v49 = vadd.f32 %v688_v42, %v3113_v26  ;;  %760 = vperm.xlu1 %2663, %v757_v21   ;;  %v2575_v26 = vld [vmem:[%s3452_s5 + $0x18] sm:$0xff]  ;;  %v906_v17 = vand.u32 4294901760, %v905_v11  ;;  %v1296_v21 = vpop.permute.xlu0 %1295 }
 0x5ea   :  { %v693_v50 = vadd.f32 %v689_v44, %v3117_v31  ;;  %v695_v52 = vmax.f32 %v691_v47, 0.0  ;;  %v818_v31 = vand.u32 4294901760, %v2979_v0 }
 0x5eb   :  { %v694_v51 = vadd.f32 %v690_v48, %v3119_v32  ;;  %v696_v54 = vmax.f32 %v692_v49, 0.0  ;;  %v49_v32 = vld [vmem:[%s3450_s3] sm:$0xff] }
 0x5ec   :  { %v697_v53 = vmax.f32 %v693_v50, 0.0  ;;  %v816_v61 = vsel %vm69_vm1, %v49_v32, 0  ;;  %v897_v62 = vsub.f32 %v2979_v0, %v818_v31 }
 0x5ed   :  { %v698_v55 = vmax.f32 %v694_v51, 0.0  ;;  %1300 = vperm.xlu1 %2663, %v2575_v26   ;;  %v885_v63 = vand.u32 4294901760, %v816_v61 }
 0x5ee   :  { %v700_v56 = vpack.c.bf16 %v697_v53, %v695_v52  ;;  %v898_v8 = vand.u32 4294901760, %v897_v62 }
 0x5ef   :  { %v701_v57 = vpack.c.bf16 %v698_v55, %v696_v54  ;;  %v886_v12 = vsub.f32 %v816_v61, %v885_v63 }
 0x5f0   :  { %v899_v0 = vsub.f32 %v897_v62, %v898_v8 }
 0x5f1   :  { %711 = vmatprep.subr.bf16.mxu0 %v701_v57  ;;  %v887_v30 = vand.u32 4294901760, %v886_v12 }
 0x5f2   :  { %712 = vmatpush1.bf16.msra.mxu0 %v700_v56  ;;  %v900_v35 = vand.u32 4294901760, %v899_v0 }
 0x5f3   :  { %v888_v1 = vsub.f32 %v886_v12, %v887_v30 }
 0x5f5   :  { %2568 = vmatmul.mubr.msk.bf16.vlgmr.msra.gmra.mrb[16].mxu0 %vm311_vm5, %v699_v60  ;;  %v889_v13 = vand.u32 4294901760, %v888_v1  ;;  %v2673_v60 = vld [vmem:[%s3451_s4 + $0x8] sm:$0xff]  }
 0x5f6   :  { %1349 = vmatprep.mubr.bf16.mxu0 %v2898_v4 }
 0x668   :  { %v761_v42 = vpop.permute.xlu1 %760 }
 0x66c   :  { %v1301_v61 = vpop.permute.xlu1 %1300 }
 0x6c8   :  { %v745_v24 = vpop.f32.mrb[16].mxu0 }
 0x6c9   :  { %v746_v3 = vadd.f32 %v745_v24, %v706_v2  ;;  %v747_v5 = vpop.f32.mrb[17].mxu0 }
 0x6ca   :  { %v748_v6 = vadd.f32 %v747_v5, %v706_v2  ;;  %v749_v7 = vpop.f32.mrb[18].mxu0 }
 0x6cb   :  { %v752_v9 = vmax.f32 %v746_v3, 0.0  ;;  %v750_v10 = vpop.f32.mrb[19].mxu0 }
 0x6cc   :  { %v753_v14 = vmax.f32 %v748_v6, 0.0 }
 0x6cd   :  { %v755_v16 = vpack.c.bf16 %v752_v9, %v752_v9 }
 0x6ce   :  { %v756_v23 = vpack.c.bf16 %v753_v14, %v753_v14 }
 0x6cf   :  { %v769_v27 = vsel %vm767_vm8, %v755_v16, 0 }
 0x6d0   :  { %2569 = vmatprep.subr.msk.bf16.mxu1 %vm767_vm8, %v756_v23 }
 0x6d1   :  { %775 = vmatpush1.bf16.msra.mxu1 %v769_v27 }
 0x6d2   :  { %819 = vmatprep.subr.mxu1 %v818_v31 }
 0x6d4   :  { %2570 = vmatmul.mubr.msk.bf16.vlgmr.msra.gmra.mrb[20].mxu1 %vm763_vm9, %v754_v33 }
 0x6d5   :  { %821 = vmatpush1.msra.mxu1 %v820_v25  ;;  %884 = vmatprep.mubr.f32.mxu1 %v2903_v36 }
 0x6d6   :  { %901 = vmatprep.subr.mxu1 %v900_v35 }
 0x6dc   :  { %890 = vmatmul.mubr.f32.vlgmr.msra.gmra.mrb[24].mxu1 %v889_v13 }
 0x6dd   :  { %907 = vmatpush1.msra.mxu1 %v906_v17  ;;  %970 = vmatprep.mubr.f32.mxu1 %v2903_v36 }
 0x6de   :  { %980 = vmatprep.subr.mxu1 %v897_v62 }
 0x6e0   :  { %972 = vmatmul.mubr.f32.vlgmr.msra.gmra.mrb[26].mxu1 %v885_v63 }
 0x6e1   :  { %983 = vmatpush1.msra.mxu1 %v903_v15  ;;  %1046 = vmatprep.mubr.f32.mxu1 %v2903_v36 }
 0x6e2   :  { %1056 = vmatprep.subr.mxu1 %v818_v31 }
 0x6e8   :  { %1049 = vmatmul.mubr.f32.vlgmr.msra.gmra.mrb[26].mxu1 %v886_v12 }
 0x6e9   :  { %1058 = vmatpush1.msra.mxu1 %v820_v25  ;;  %1121 = vmatprep.mubr.f32.mxu1 %v2903_v36 }
 0x6ea   :  { %1134 = vmatprep.subr.mxu1 %v898_v8 }
 0x6f0   :  { %1125 = vmatmul.mubr.f32.vlgmr.msra.gmra.mrb[26].mxu1 %v887_v30 }
 0x6f1   :  { %1138 = vmatpush1.msra.mxu1 %v904_v34  ;;  %1201 = vmatprep.mubr.f32.mxu1 %v2903_v36 }
 0x6f2   :  { %1210 = vmatprep.subr.mxu1 %v818_v31 }
 0x6f8   :  { %1203 = vmatmul.mubr.f32.vlgmr.msra.gmra.mrb[26].mxu1 %v885_v63 }
 0x6f9   :  { %1212 = vmatpush1.msra.mxu1 %v820_v25  ;;  %1275 = vmatprep.mubr.f32.mxu1 %v2903_v36 }
 0x700   :  { %1277 = vmatmul.mubr.f32.vlgmr.msra.gmra.mrb[26].mxu1 %v885_v63 }
 0x701   :  { %1559 = vmatprep.mubr.bf16.mxu1 %v2898_v4 }
 0x7a7   :  { %v808_v18 = vpop.f32.mrb[20].mxu1 }
 0x7a8   :  { %v810_v37 = vpop.f32.mrb[21].mxu1  ;;  %v809_v43 = vadd.f32 %v808_v18, %v761_v42 }
 0x7a9   :  { %v812_v38 = vpop.f32.mrb[22].mxu1  ;;  %v811_v44 = vadd.f32 %v810_v37, %v761_v42 }
 0x7aa   :  { %v813_v41 = vpop.f32.mrb[23].mxu1 }
 0x7af   :  { %v891_v47 = vpop.f32.mrb[24].mxu1 }
 0x7b0   :  { %v892_v48 = vadd.f32 %v891_v47, %v809_v43  ;;  %v893_v49 = vpop.f32.mrb[25].mxu1  ;;  %v2675_v47 = vld [vmem:[%s3453_s6 + $0x28] sm:$0xff]  }
 0x7b1   :  { %v894_v50 = vadd.f32 %v893_v49, %v811_v44  ;;  %v2674_v44 = vld [vmem:[%s3453_s6 + $0x20] sm:$0xff]  }
 0x7d3   :  { %v1278_v51 = vpop.f32.mrb[26].mxu1 }
 0x7d4   :  { %v3241_v52 = vadd.f32 %v1278_v51, %v892_v48  ;;  %v1280_v53 = vpop.f32.mrb[27].mxu1 }
 0x7d5   :  { %v3243_v54 = vadd.f32 %v1280_v53, %v894_v50 }
 0x7d6   :  { %v1283_v55 = vpack.c.bf16 %v3241_v52, %v3241_v52 }
 0x7d7   :  { %v1284_v56 = vpack.c.bf16 %v3243_v54, %v3243_v54 }
 0x7d8   :  { %v1312_v57 = vsel %vm73_vm0, %v1283_v55, 0 }
 0x7d9   :  { %2577 = vmatprep.subr.msk.bf16.mxu0 %vm73_vm0, %v1284_v56 }
 0x7da   :  { %1318 = vmatpush1.bf16.msra.mxu0 %v1312_v57 }
 0x7dd   :  { %2578 = vmatmul.mubr.msk.bf16.vlgmr.msra.gmra.mrb[20].mxu0 %vm69_vm1, %v2673_v60 }
 0x7de   :  { %1451 = vmatprep.mubr.bf16.mxu0 %v2898_v4 }
 0x8b0   :  { %v1351_v26 = vpop.f32.mrb[20].mxu0 }
 0x8b1   :  { %v3256_v31 = vadd.f32 %v1351_v26, %v1296_v21  ;;  %v1353_v32 = vpop.f32.mrb[21].mxu0 }
 0x8b2   :  { %v1355_v62 = vpop.f32.mrb[22].mxu0  ;;  %v3262_v24 = vadd.f32 %v1353_v32, %v1296_v21 }
 0x8b3   :  { %v3258_v63 = vadd.f32 %v1355_v62, %v1301_v61  ;;  %v1357_v2 = vpop.f32.mrb[23].mxu0  ;;  %1360 = vrot.lane.b32.xlu0 %v3256_v31, %s2899_s17 }
 0x8b4   :  { %v3266_v25 = vadd.f32 %v1357_v2, %v1301_v61 }
 0x8b5   :  { %1362 = vrot.lane.b32.xlu1 %v3258_v63, %s2899_s17  ;;  %v1394_v17 = vpack.c.bf16 %v3258_v63, %v3256_v31 }
 0x8b6   :  { %v1395_v35 = vpack.c.bf16 %v3266_v25, %v3262_v24 }
 0x8b7   :  { %1364 = vrot.lane.b32.xlu0 %v3262_v24, %s2899_s17 }
 0x8b9   :  { %1366 = vrot.lane.b32.xlu1 %v3266_v25, %s2899_s17 }
 0x8bb   :  { %1376 = vrot.lane.b32.xlu0 %v3256_v31, %s2900_s18 }
 0x8bd   :  { %1378 = vrot.lane.b32.xlu1 %v3258_v63, %s2900_s18 }
 0x8bf   :  { %1380 = vrot.lane.b32.xlu0 %v3262_v24, %s2900_s18 }
 0x8c1   :  { %1382 = vrot.lane.b32.xlu1 %v3266_v25, %s2900_s18 }
 0x925   :  { %v1361_v3 = vpop.permute.xlu0 %1360 }
 0x927   :  { %v1363_v5 = vpop.permute.xlu1 %1362 }
 0x929   :  { %v1365_v6 = vpop.permute.xlu0 %1364 }
 0x92a   :  { %v1368_v7 = vsel %vm133_vm2, %v1361_v3, %v1365_v6  ;;  %v1370_v8 = vsel %vm133_vm2, %v1365_v6, %v1361_v3 }
 0x92b   :  { %v1367_v9 = vpop.permute.xlu1 %1366  ;;  %v1372_v14 = vmul.f32 %v1370_v8, %v3048_v28  ;;  %v1373_v15 = vmul.f32 %v1368_v7, %v3051_v29 }
 0x92c   :  { %v1369_v10 = vsel %vm133_vm2, %v1363_v5, %v1367_v9  ;;  %v1371_v12 = vsel %vm133_vm2, %v1367_v9, %v1363_v5 }
 0x92d   :  { %v1374_v16 = vmul.f32 %v1371_v12, %v3048_v28  ;;  %v1375_v23 = vmul.f32 %v1369_v10, %v3051_v29  ;;  %v1377_v0 = vpop.permute.xlu0 %1376 }
 0x92f   :  { %v1392_v27 = vpack.c.bf16 %v1374_v16, %v1372_v14  ;;  %v1379_v30 = vpop.permute.xlu1 %1378  ;;  %v1393_v33 = vpack.c.bf16 %v1375_v23, %v1373_v15 }
 0x931   :  { %1419 = vmatprep.subr.bf16.mxu0 %v1393_v33  ;;  %v1381_v34 = vpop.permute.xlu0 %1380 }
 0x932   :  { %v1384_v1 = vsel %vm162_vm3, %v1377_v0, %v1381_v34  ;;  %v1386_v11 = vsel %vm162_vm3, %v1381_v34, %v1377_v0  ;;  %1420 = vmatpush1.bf16.msra.mxu0 %v1392_v27 }
 0x933   :  { %v1383_v13 = vpop.permute.xlu1 %1382  ;;  %1421 = vmatprep.subr.bf16.mxu0 %v1395_v35  ;;  %v1388_v18 = vmul.f32 %v1384_v1, %v3070_v45  ;;  %v1389_v37 = vmul.f32 %v1386_v11, %v3073_v46  ;;  %v2676_v35 = vld [vmem:[%s3454_s7 + $0x20] sm:$0xff]   ;;  %v2677_v1 = vld [vmem:[%s3454_s7 + $0x28] sm:$0xff]  }
 0x934   :  { %v1385_v28 = vsel %vm162_vm3, %v1379_v30, %v1383_v13  ;;  %v1387_v29 = vsel %vm162_vm3, %v1383_v13, %v1379_v30 }
 0x935   :  { %v1390_v38 = vmul.f32 %v1385_v28, %v3070_v45  ;;  %v1391_v41 = vmul.f32 %v1387_v29, %v3073_v46 }
 0x936   :  { %1422 = vmatpush1.bf16.msra.mxu0 %v1394_v17 }
 0x937   :  { %v1396_v42 = vpack.c.bf16 %v1390_v38, %v1388_v18  ;;  %v1397_v43 = vpack.c.bf16 %v1391_v41, %v1389_v37 }
 0x939   :  { %1423 = vmatprep.subr.bf16.mxu0 %v1397_v43 }
 0x93a   :  { %1424 = vmatpush1.bf16.msra.mxu0 %v1396_v42 }
 0x93d   :  { %2585 = vmatmul.mubr.msk.bf16.vlgmr.msra.gmra.mrb[24].mxu0 %vm203_vm4, %v2674_v44 }
 0x93e   :  { %1461 = vmatprep.mubr.bf16.mxu0 %v2898_v4 }
 0x945   :  { %2586 = vmatmul.mubr.msk.bf16.gmra.mrb[28].mxu0 %vm203_vm4, %v2675_v47 }
 0x946   :  { %1711 = vmatprep.mubr.bf16.mxu0 %v2898_v4 }
 0xa10   :  { %v1453_v45 = vpop.f32.mrb[24].mxu0 }
 0xa11   :  { %v1455_v46 = vpop.f32.mrb[25].mxu0 }
 0xa12   :  { %v1457_v48 = vpop.f32.mrb[26].mxu0 }
 0xa13   :  { %v1459_v49 = vpop.f32.mrb[27].mxu0 }
 0xa18   :  { %v1463_v50 = vpop.f32.mrb[28].mxu0 }
 0xa19   :  { %v2587_v51 = vmul.f32 -1.442695, %v1463_v50  ;;  %v1465_v53 = vpop.f32.mrb[29].mxu0 }
 0xa1a   :  { %v2588_v55 = vmul.f32 -1.442695, %v1465_v53  ;;  %v1467_v56 = vpop.f32.mrb[30].mxu0 }
 0xa1b   :  { %2778 = vpow2.f32 %v2587_v51  ;;  %v2589_v57 = vmul.f32 -1.442695, %v1467_v56  ;;  %v1469_v60 = vpop.f32.mrb[31].mxu0 }
 0xa1c   :  { %2780 = vpow2.f32 %v2588_v55  ;;  %v2590_v21 = vmul.f32 -1.442695, %v1469_v60 }
 0xa1d   :  { %2782 = vpow2.f32 %v2589_v57 }
 0xa1e   :  { %2784 = vpow2.f32 %v2590_v21 }
 0xa1f   :  { %2786 = vtanh.f32 %v1453_v45 }
 0xa20   :  { %2788 = vtanh.f32 %v1455_v46 }
 0xa21   :  { %2790 = vtanh.f32 %v1457_v48 }
 0xa22   :  { %2792 = vtanh.f32 %v1459_v49 }
 0xa25   :  { %v2779_v26 = vpop.eup %2778 }
 0xa26   :  { %v2781_v32 = vpop.eup %2780  ;;  %v1488_v61 = vadd.f32 1.0, %v2779_v26 }
 0xa27   :  { %v2783_v62 = vpop.eup %2782  ;;  %v1489_v2 = vadd.f32 1.0, %v2781_v32 }
 0xa28   :  { %v2785_v3 = vpop.eup %2784  ;;  %2794 = vrcp.f32 %v1488_v61  ;;  %v1490_v5 = vadd.f32 1.0, %v2783_v62 }
 0xa29   :  { %2796 = vrcp.f32 %v1489_v2  ;;  %v1491_v6 = vadd.f32 1.0, %v2785_v3  ;;  %v2787_v7 = vpop.eup %2786 }
 0xa2a   :  { %2798 = vrcp.f32 %v1490_v5  ;;  %v2789_v8 = vpop.eup %2788 }
 0xa2b   :  { %2800 = vrcp.f32 %v1491_v6  ;;  %v2791_v9 = vpop.eup %2790 }
 0xa2c   :  { %v2793_v10 = vpop.eup %2792 }
 0xa32   :  { %v2795_v12 = vpop.eup %2794 }
 0xa33   :  { %v2797_v14 = vpop.eup %2796  ;;  %v1500_v15 = vmul.f32 %v2795_v12, %v2787_v7 }
 0xa34   :  { %v2799_v16 = vpop.eup %2798  ;;  %v1501_v23 = vmul.f32 %v2797_v14, %v2789_v8 }
 0xa35   :  { %v2801_v0 = vpop.eup %2800  ;;  %v1502_v27 = vmul.f32 %v2799_v16, %v2791_v9 }
 0xa36   :  { %v1503_v30 = vmul.f32 %v2801_v0, %v2793_v10 }
 0xa37   :  { %v1509_v33 = vpack.c.bf16 %v1502_v27, %v1500_v15 }
 0xa38   :  { %v1510_v34 = vpack.c.bf16 %v1503_v30, %v1501_v23 }
 0xa3a   :  { %1527 = vmatprep.subr.bf16.mxu1 %v1510_v34 }
 0xa3b   :  { %1528 = vmatpush1.bf16.msra.mxu1 %v1509_v33 }
 0xa3e   :  { %2597 = vmatmul.mubr.msk.bf16.vlgmr.msra.gmra.mrb[28].mxu1 %vm311_vm5, %v2676_v35 }
 0xa3f   :  { %1569 = vmatprep.mubr.bf16.mxu1 %v2898_v4 }
 0xa46   :  { %2598 = vmatmul.mubr.msk.bf16.gmra.mrb[32].mxu1 %vm311_vm5, %v2677_v1 }
 0xa47   :  { %1819 = vmatprep.mubr.bf16.mxu1 %v2898_v4 }
 0xb11   :  { %v1561_v11 = vpop.f32.mrb[28].mxu1 }
 0xb12   :  { %v1563_v13 = vpop.f32.mrb[29].mxu1 }
 0xb13   :  { %v1565_v28 = vpop.f32.mrb[30].mxu1 }
 0xb14   :  { %v1567_v29 = vpop.f32.mrb[31].mxu1 }
 0xb19   :  { %v1571_v17 = vpop.f32.mrb[32].mxu1 }
 0xb1a   :  { %v2599_v18 = vmul.f32 -1.442695, %v1571_v17  ;;  %v1573_v37 = vpop.f32.mrb[33].mxu1 }
 0xb1b   :  { %v2600_v38 = vmul.f32 -1.442695, %v1573_v37  ;;  %v1575_v41 = vpop.f32.mrb[34].mxu1 }
 0xb1c   :  { %2802 = vpow2.f32 %v2599_v18  ;;  %v2601_v42 = vmul.f32 -1.442695, %v1575_v41  ;;  %v1577_v43 = vpop.f32.mrb[35].mxu1 }
 0xb1d   :  { %2804 = vpow2.f32 %v2600_v38  ;;  %v2602_v44 = vmul.f32 -1.442695, %v1577_v43 }
 0xb1e   :  { %2806 = vpow2.f32 %v2601_v42 }
 0xb1f   :  { %2808 = vpow2.f32 %v2602_v44 }
 0xb20   :  { %2810 = vtanh.f32 %v1561_v11 }
 0xb21   :  { %2812 = vtanh.f32 %v1563_v13 }
 0xb22   :  { %2814 = vtanh.f32 %v1565_v28 }
 0xb23   :  { %2816 = vtanh.f32 %v1567_v29 }
 0xb26   :  { %v2803_v47 = vpop.eup %2802 }
 0xb27   :  { %v2805_v45 = vpop.eup %2804  ;;  %v1596_v46 = vadd.f32 1.0, %v2803_v47 }
 0xb28   :  { %v2807_v48 = vpop.eup %2806  ;;  %v1597_v49 = vadd.f32 1.0, %v2805_v45  ;;  %v2678_v45 = vld [vmem:[%s3453_s6 + $0x30] sm:$0xff]  }
 0xb29   :  { %v2809_v50 = vpop.eup %2808  ;;  %2818 = vrcp.f32 %v1596_v46  ;;  %v1598_v51 = vadd.f32 1.0, %v2807_v48 }
 0xb2a   :  { %2820 = vrcp.f32 %v1597_v49  ;;  %v1599_v53 = vadd.f32 1.0, %v2809_v50  ;;  %v2811_v55 = vpop.eup %2810 }
 0xb2b   :  { %2822 = vrcp.f32 %v1598_v51  ;;  %v2813_v56 = vpop.eup %2812 }
 0xb2c   :  { %2824 = vrcp.f32 %v1599_v53  ;;  %v2815_v57 = vpop.eup %2814 }
 0xb2d   :  { %v2817_v60 = vpop.eup %2816 }
 0xb33   :  { %v2819_v21 = vpop.eup %2818 }
 0xb34   :  { %v2821_v26 = vpop.eup %2820  ;;  %v3328_v32 = vmul.f32 %v2819_v21, %v2811_v55 }
 0xb35   :  { %v2823_v61 = vpop.eup %2822  ;;  %v3330_v62 = vmul.f32 %v2821_v26, %v2813_v56 }
 0xb36   :  { %v2825_v2 = vpop.eup %2824  ;;  %v1616_v3 = vadd.f32 %v3328_v32, %v3256_v31  ;;  %v3334_v5 = vmul.f32 %v2823_v61, %v2815_v57  ;;  %v2628_v31 = vld [vmem:[%s3456_s9 + $0x4] sm:$0xf] }
 0xb37   :  { %v3336_v6 = vmul.f32 %v2825_v2, %v2817_v60  ;;  %v1617_v8 = vadd.f32 %v3330_v62, %v3262_v24 }
 0xb38   :  { %1620 = vrot.lane.b32.xlu0 %v1616_v3, %s2901_s0  ;;  %v1618_v7 = vadd.f32 %v3334_v5, %v3258_v63  ;;  %v2631_v63 = vld [vmem:[%s3458_s11 + $0x8] sm:$0xff] }
 0xb39   :  { %v1619_v9 = vadd.f32 %v3336_v6, %v3266_v25 }
 0xb3a   :  { %1622 = vrot.lane.b32.xlu1 %v1618_v7, %s2901_s0  ;;  %v1654_v10 = vpack.c.bf16 %v1618_v7, %v1616_v3 }
 0xb3b   :  { %v1655_v12 = vpack.c.bf16 %v1619_v9, %v1617_v8 }
 0xb3c   :  { %1624 = vrot.lane.b32.xlu0 %v1617_v8, %s2901_s0 }
 0xb3e   :  { %1626 = vrot.lane.b32.xlu1 %v1619_v9, %s2901_s0 }
 0xb40   :  { %1636 = vrot.lane.b32.xlu0 %v1616_v3, %s2902_s14 }
 0xb42   :  { %1638 = vrot.lane.b32.xlu1 %v1618_v7, %s2902_s14 }
 0xb44   :  { %1640 = vrot.lane.b32.xlu0 %v1617_v8, %s2902_s14 }
 0xb46   :  { %1642 = vrot.lane.b32.xlu1 %v1619_v9, %s2902_s14 }
 0xb48   :  { %1888 = vperm.xlu0 %2662, %v2628_v31  }
 0xb4a   :  { %1945 = vperm.xlu1 %2663, %v2631_v63  }
 0xbaa   :  { %v1621_v24 = vpop.permute.xlu0 %1620 }
 0xbac   :  { %v1623_v25 = vpop.permute.xlu1 %1622 }
 0xbae   :  { %v1625_v14 = vpop.permute.xlu0 %1624 }
 0xbaf   :  { %v1628_v15 = vsel %vm419_vm6, %v1621_v24, %v1625_v14  ;;  %v1630_v16 = vsel %vm419_vm6, %v1625_v14, %v1621_v24 }
 0xbb0   :  { %v1627_v23 = vpop.permute.xlu1 %1626  ;;  %v1632_v30 = vmul.f32 %v1630_v16, %v3146_v39  ;;  %v1633_v33 = vmul.f32 %v1628_v15, %v3149_v40 }
 0xbb1   :  { %v1629_v0 = vsel %vm419_vm6, %v1623_v25, %v1627_v23  ;;  %v1631_v27 = vsel %vm419_vm6, %v1627_v23, %v1623_v25 }
 0xbb2   :  { %v1634_v34 = vmul.f32 %v1631_v27, %v3146_v39  ;;  %v1635_v35 = vmul.f32 %v1629_v0, %v3149_v40  ;;  %v1637_v1 = vpop.permute.xlu0 %1636 }
 0xbb4   :  { %v1652_v11 = vpack.c.bf16 %v1634_v34, %v1632_v30  ;;  %v1639_v13 = vpop.permute.xlu1 %1638  ;;  %v1653_v28 = vpack.c.bf16 %v1635_v35, %v1633_v33  ;;  %v2680_v34 = vld [vmem:[%s3454_s7 + $0x30] sm:$0xff]   ;;  %v2681_v35 = vld [vmem:[%s3454_s7 + $0x38] sm:$0xff]  }
 0xbb6   :  { %v1641_v29 = vpop.permute.xlu0 %1640  ;;  %1679 = vmatprep.subr.bf16.mxu0 %v1653_v28 }
 0xbb7   :  { %v1644_v17 = vsel %vm449_vm7, %v1637_v1, %v1641_v29  ;;  %v1646_v18 = vsel %vm449_vm7, %v1641_v29, %v1637_v1  ;;  %1680 = vmatpush1.bf16.msra.mxu0 %v1652_v11 }
 0xbb8   :  { %v1643_v37 = vpop.permute.xlu1 %1642  ;;  %1681 = vmatprep.subr.bf16.mxu0 %v1655_v12  ;;  %v1648_v38 = vmul.f32 %v1644_v17, %v3168_v58  ;;  %v1649_v41 = vmul.f32 %v1646_v18, %v3171_v59 }
 0xbb9   :  { %v1645_v39 = vsel %vm449_vm7, %v1639_v13, %v1643_v37  ;;  %v1647_v40 = vsel %vm449_vm7, %v1643_v37, %v1639_v13 }
 0xbba   :  { %v1650_v42 = vmul.f32 %v1645_v39, %v3168_v58  ;;  %v1651_v43 = vmul.f32 %v1647_v40, %v3171_v59 }
 0xbbb   :  { %1682 = vmatpush1.bf16.msra.mxu0 %v1654_v10 }
 0xbbc   :  { %v1656_v44 = vpack.c.bf16 %v1650_v42, %v1648_v38  ;;  %v1657_v47 = vpack.c.bf16 %v1651_v43, %v1649_v41 }
 0xbbe   :  { %1683 = vmatprep.subr.bf16.mxu0 %v1657_v47 }
 0xbbf   :  { %1684 = vmatpush1.bf16.msra.mxu0 %v1656_v44 }
 0xbc2   :  { %2609 = vmatmul.mubr.msk.bf16.vlgmr.msra.gmra.mrb[32].mxu0 %vm203_vm4, %v2678_v45 }
 0xbc3   :  { %1721 = vmatprep.mubr.bf16.mxu0 %v2898_v4 }
 0xbca   :  { %2610 = vmatmul.mubr.msk.bf16.gmra.mrb[36].mxu0 %vm203_vm4, %v2679_v22 }
 0xbcb   :  { %1926 = vmatprep.mubr.bf16.mxu0 %v2898_v4 }
 0xc95   :  { %v1713_v58 = vpop.f32.mrb[32].mxu0 }
 0xc96   :  { %v1715_v59 = vpop.f32.mrb[33].mxu0 }
 0xc97   :  { %v1717_v46 = vpop.f32.mrb[34].mxu0 }
 0xc98   :  { %v1719_v48 = vpop.f32.mrb[35].mxu0 }
 0xc9d   :  { %v1723_v49 = vpop.f32.mrb[36].mxu0 }
 0xc9e   :  { %v2611_v50 = vmul.f32 -1.442695, %v1723_v49  ;;  %v1725_v51 = vpop.f32.mrb[37].mxu0  ;;  %v2571_v49 = vld [vmem:[%s3450_s3 + $0x8] sm:$0xff] }
 0xc9f   :  { %v2612_v53 = vmul.f32 -1.442695, %v1725_v51  ;;  %v1727_v55 = vpop.f32.mrb[38].mxu0 }
 0xca0   :  { %2826 = vpow2.f32 %v2611_v50  ;;  %v2613_v56 = vmul.f32 -1.442695, %v1727_v55  ;;  %v1729_v57 = vpop.f32.mrb[39].mxu0 }
 0xca1   :  { %2828 = vpow2.f32 %v2612_v53  ;;  %v2614_v60 = vmul.f32 -1.442695, %v1729_v57  ;;  %v2001_v53 = vand.u32 4294901760, %v3243_v54 }
 0xca2   :  { %2830 = vpow2.f32 %v2613_v56  ;;  %v1999_v56 = vsel %vm69_vm1, %v2571_v49, 0 }
 0xca3   :  { %2832 = vpow2.f32 %v2614_v60 }
 0xca4   :  { %2834 = vtanh.f32 %v1713_v58 }
 0xca5   :  { %2836 = vtanh.f32 %v1715_v59 }
 0xca6   :  { %2838 = vtanh.f32 %v1717_v46 }
 0xca7   :  { %2840 = vtanh.f32 %v1719_v48 }
 0xcaa   :  { %v2827_v21 = vpop.eup %2826 }
 0xcab   :  { %v2829_v26 = vpop.eup %2828  ;;  %v1748_v61 = vadd.f32 1.0, %v2827_v21 }
 0xcac   :  { %v2831_v2 = vpop.eup %2830  ;;  %v1749_v3 = vadd.f32 1.0, %v2829_v26 }
 0xcad   :  { %v2833_v7 = vpop.eup %2832  ;;  %2842 = vrcp.f32 %v1748_v61  ;;  %v1750_v8 = vadd.f32 1.0, %v2831_v2 }
 0xcae   :  { %2844 = vrcp.f32 %v1749_v3  ;;  %v1751_v9 = vadd.f32 1.0, %v2833_v7  ;;  %v2835_v10 = vpop.eup %2834  ;;  %v2068_v3 = vand.u32 4294901760, %v1999_v56  ;;  %v2080_v7 = vsub.f32 %v3243_v54, %v2001_v53 }
 0xcaf   :  { %2846 = vrcp.f32 %v1750_v8  ;;  %v2837_v12 = vpop.eup %2836 }
 0xcb0   :  { %2848 = vrcp.f32 %v1751_v9  ;;  %v2839_v31 = vpop.eup %2838 }
 0xcb1   :  { %v2841_v63 = vpop.eup %2840 }
 0xcb7   :  { %v2843_v24 = vpop.eup %2842 }
 0xcb8   :  { %v2845_v25 = vpop.eup %2844  ;;  %v1760_v14 = vmul.f32 %v2843_v24, %v2835_v10 }
 0xcb9   :  { %v2847_v15 = vpop.eup %2846  ;;  %v1761_v16 = vmul.f32 %v2845_v25, %v2837_v12  ;;  %v2069_v25 = vsub.f32 %v1999_v56, %v2068_v3 }
 0xcba   :  { %v2849_v23 = vpop.eup %2848  ;;  %v1762_v0 = vmul.f32 %v2847_v15, %v2839_v31  ;;  %v2003_v31 = vand.u32 4294901760, %v3241_v52 }
 0xcbb   :  { %v1763_v27 = vmul.f32 %v2849_v23, %v2841_v63 }
 0xcbc   :  { %v1769_v30 = vpack.c.bf16 %v1762_v0, %v1760_v14  ;;  %v2086_v0 = vsub.f32 %v3241_v52, %v2003_v31 }
 0xcbd   :  { %v1770_v33 = vpack.c.bf16 %v1763_v27, %v1761_v16  ;;  %v2081_v16 = vand.u32 4294901760, %v2080_v7  ;;  %v2070_v27 = vand.u32 4294901760, %v2069_v25 }
 0xcbf   :  { %1787 = vmatprep.subr.bf16.mxu1 %v1770_v33  ;;  %v2082_v54 = vsub.f32 %v2080_v7, %v2081_v16 }
 0xcc0   :  { %1788 = vmatpush1.bf16.msra.mxu1 %v1769_v30  ;;  %v2071_v30 = vsub.f32 %v2069_v25, %v2070_v27 }
 0xcc2   :  { %v2072_v52 = vand.u32 4294901760, %v2071_v30 }
 0xcc3   :  { %2621 = vmatmul.mubr.msk.bf16.vlgmr.msra.gmra.mrb[36].mxu1 %vm311_vm5, %v2680_v34 }
 0xcc4   :  { %1829 = vmatprep.mubr.bf16.mxu1 %v2898_v4 }
 0xccb   :  { %2622 = vmatmul.mubr.msk.bf16.gmra.mrb[40].mxu1 %vm311_vm5, %v2681_v35  ;;  %v1889_v35 = vpop.permute.xlu0 %1888 }
 0xccc   :  { %1989 = vmatprep.mubr.bf16.mxu1 %v2898_v4 }
 0xd96   :  { %v1821_v1 = vpop.f32.mrb[36].mxu1 }
 0xd97   :  { %v1823_v11 = vpop.f32.mrb[37].mxu1 }
 0xd98   :  { %v1825_v13 = vpop.f32.mrb[38].mxu1 }
 0xd99   :  { %v1827_v28 = vpop.f32.mrb[39].mxu1 }
 0xd9e   :  { %v1831_v29 = vpop.f32.mrb[40].mxu1 }
 0xd9f   :  { %v2623_v17 = vmul.f32 -1.442695, %v1831_v29  ;;  %v1833_v18 = vpop.f32.mrb[41].mxu1 }
 0xda0   :  { %v2624_v37 = vmul.f32 -1.442695, %v1833_v18  ;;  %v1835_v39 = vpop.f32.mrb[42].mxu1 }
 0xda1   :  { %2850 = vpow2.f32 %v2623_v17  ;;  %v2625_v40 = vmul.f32 -1.442695, %v1835_v39  ;;  %v1837_v38 = vpop.f32.mrb[43].mxu1 }
 0xda2   :  { %2852 = vpow2.f32 %v2624_v37  ;;  %v2626_v41 = vmul.f32 -1.442695, %v1837_v38 }
 0xda3   :  { %2854 = vpow2.f32 %v2625_v40 }
 0xda4   :  { %2856 = vpow2.f32 %v2626_v41 }
 0xda5   :  { %2858 = vtanh.f32 %v1821_v1 }
 0xda6   :  { %2860 = vtanh.f32 %v1823_v11 }
 0xda7   :  { %2862 = vtanh.f32 %v1825_v13 }
 0xda8   :  { %2864 = vtanh.f32 %v1827_v28 }
 0xdab   :  { %v2851_v42 = vpop.eup %2850 }
 0xdac   :  { %v2853_v4 = vpop.eup %2852  ;;  %v1856_v43 = vadd.f32 1.0, %v2851_v42 }
 0xdad   :  { %v2855_v44 = vpop.eup %2854  ;;  %v1857_v47 = vadd.f32 1.0, %v2853_v4 }
 0xdae   :  { %v2857_v45 = vpop.eup %2856  ;;  %2866 = vrcp.f32 %v1856_v43  ;;  %v1858_v22 = vadd.f32 1.0, %v2855_v44  ;;  %v1946_v44 = vpop.permute.xlu1 %1945 }
 0xdaf   :  { %2868 = vrcp.f32 %v1857_v47  ;;  %v1859_v58 = vadd.f32 1.0, %v2857_v45  ;;  %v2859_v59 = vpop.eup %2858 }
 0xdb0   :  { %2870 = vrcp.f32 %v1858_v22  ;;  %v2861_v46 = vpop.eup %2860 }
 0xdb1   :  { %2872 = vrcp.f32 %v1859_v58  ;;  %v2863_v48 = vpop.eup %2862 }
 0xdb2   :  { %v2865_v50 = vpop.eup %2864 }
 0xdb8   :  { %v2867_v51 = vpop.eup %2866 }
 0xdb9   :  { %v2869_v55 = vpop.eup %2868  ;;  %v1868_v57 = vmul.f32 %v2867_v51, %v2859_v59 }
 0xdba   :  { %v2871_v60 = vpop.eup %2870  ;;  %v1869_v21 = vmul.f32 %v2869_v55, %v2861_v46 }
 0xdbb   :  { %v2873_v26 = vpop.eup %2872  ;;  %v1870_v61 = vmul.f32 %v2871_v60, %v2863_v48  ;;  %v1872_v2 = vadd.f32 %v1868_v57, %v3328_v32 }
 0xdbc   :  { %v1871_v8 = vmul.f32 %v2873_v26, %v2865_v50  ;;  %v1873_v9 = vadd.f32 %v1869_v21, %v3330_v62  ;;  %v2627_v62 = vld [vmem:[%s3455_s8 + $0x2] sm:$0x3] }
 0xdbd   :  { %v1874_v10 = vadd.f32 %v1870_v61, %v3334_v5  ;;  %v1876_v63 = vmax.f32 %v1872_v2, 0.0  ;;  %v2087_v5 = vand.u32 4294901760, %v2086_v0 }
 0xdbe   :  { %v1875_v12 = vadd.f32 %v1871_v8, %v3336_v6  ;;  %v1877_v14 = vmax.f32 %v1873_v9, 0.0  ;;  %v2083_v6 = vand.u32 4294901760, %v2082_v54 }
 0xdbf   :  { %v1878_v24 = vmax.f32 %v1874_v10, 0.0  ;;  %v2088_v33 = vsub.f32 %v2086_v0, %v2087_v5 }
 0xdc0   :  { %v1879_v15 = vmax.f32 %v1875_v12, 0.0 }
 0xdc1   :  { %v1882_v23 = vpack.c.bf16 %v1878_v24, %v1876_v63  ;;  %v2089_v34 = vand.u32 4294901760, %v2088_v33 }
 0xdc2   :  { %v1883_v32 = vpack.c.bf16 %v1879_v15, %v1877_v14 }
 0xdc4   :  { %1894 = vmatprep.subr.bf16.mxu0 %v1883_v32 }
 0xdc5   :  { %1895 = vmatpush1.bf16.msra.mxu0 %v1882_v23 }
 0xdc6   :  { %2002 = vmatprep.subr.mxu0 %v2001_v53 }
 0xdc8   :  { %2629 = vmatmul.mubr.msk.bf16.vlgmr.msra.gmra.mrb[40].mxu0 %vm311_vm5, %v2627_v62 }
 0xdc9   :  { %2004 = vmatpush1.msra.mxu0 %v2003_v31  ;;  %2067 = vmatprep.mubr.f32.mxu0 %v2903_v36 }
 0xdca   :  { %2084 = vmatprep.subr.mxu0 %v2083_v6 }
 0xdd0   :  { %2073 = vmatmul.mubr.f32.vlgmr.msra.gmra.mrb[44].mxu0 %v2072_v52 }
 0xdd1   :  { %2090 = vmatpush1.msra.mxu0 %v2089_v34  ;;  %2153 = vmatprep.mubr.f32.mxu0 %v2903_v36 }
 0xdd2   :  { %2163 = vmatprep.subr.mxu0 %v2080_v7 }
 0xdd4   :  { %2155 = vmatmul.mubr.f32.vlgmr.msra.gmra.mrb[46].mxu0 %v2068_v3 }
 0xdd5   :  { %2166 = vmatpush1.msra.mxu0 %v2086_v0  ;;  %2229 = vmatprep.mubr.f32.mxu0 %v2903_v36 }
 0xdd6   :  { %2239 = vmatprep.subr.mxu0 %v2001_v53 }
 0xddc   :  { %2232 = vmatmul.mubr.f32.vlgmr.msra.gmra.mrb[46].mxu0 %v2069_v25 }
 0xddd   :  { %2241 = vmatpush1.msra.mxu0 %v2003_v31  ;;  %2304 = vmatprep.mubr.f32.mxu0 %v2903_v36 }
 0xdde   :  { %2317 = vmatprep.subr.mxu0 %v2081_v16 }
 0xde4   :  { %2308 = vmatmul.mubr.f32.vlgmr.msra.gmra.mrb[46].mxu0 %v2070_v27 }
 0xde5   :  { %2321 = vmatpush1.msra.mxu0 %v2087_v5  ;;  %2384 = vmatprep.mubr.f32.mxu0 %v2903_v36 }
 0xde6   :  { %2393 = vmatprep.subr.mxu0 %v2001_v53 }
 0xdec   :  { %2386 = vmatmul.mubr.f32.vlgmr.msra.gmra.mrb[46].mxu0 %v2068_v3 }
 0xded   :  { %2395 = vmatpush1.msra.mxu0 %v2003_v31  ;;  %2458 = vmatprep.mubr.f32.mxu0 %v2903_v36  ;;  %v2630_v36 = vld [vmem:[%s3457_s10 + $0x4] sm:$0xf]  ;;  %s2874_s10 = scalar_lea.vmem %s2512_s25, 256 }
 0xdee   :  { %p2875_p0 = scmp.ne.s32.totalorder %s2512_s25, %s2874_s10  ;;  %p2880_p2 = scmp.lt.s32.totalorder %s2874_s10, %s2874_s10 }
 0xdf0   :  { %p2881_p3 = por %p2880_p2, %p2879_p1 }
 0xdf2   :  { %p2882_p4 = pnand %p2881_p3, %p2875_p0 }
 0xdf4   :  { %2460 = vmatmul.mubr.f32.vlgmr.msra.gmra.mrb[46].mxu0 %v2068_v3 }
 0xe9b   :  { %v1928_v1 = vpop.f32.mrb[40].mxu0 }
 0xe9c   :  { %v1929_v11 = vadd.f32 %v1928_v1, %v1889_v35  ;;  %v1930_v13 = vpop.f32.mrb[41].mxu0 }
 0xe9d   :  { %v1931_v28 = vadd.f32 %v1930_v13, %v1889_v35  ;;  %v1932_v29 = vpop.f32.mrb[42].mxu0 }
 0xe9e   :  { %v1935_v17 = vmax.f32 %v1929_v11, 0.0  ;;  %v1933_v18 = vpop.f32.mrb[43].mxu0 }
 0xe9f   :  { %v1936_v37 = vmax.f32 %v1931_v28, 0.0 }
 0xea0   :  { %v1939_v39 = vpack.c.bf16 %v1935_v17, %v1935_v17 }
 0xea1   :  { %v1940_v40 = vpack.c.bf16 %v1936_v37, %v1936_v37 }
 0xea2   :  { %v1952_v38 = vsel %vm767_vm8, %v1939_v39, 0 }
 0xea3   :  { %2632 = vmatprep.subr.msk.bf16.mxu1 %vm767_vm8, %v1940_v40  ;;  %v2074_v41 = vpop.f32.mrb[44].mxu0 }
 0xea4   :  { %1958 = vmatpush1.bf16.msra.mxu1 %v1952_v38  ;;  %v2076_v42 = vpop.f32.mrb[45].mxu0 }
 0xea7   :  { %2633 = vmatmul.mubr.msk.bf16.vlgmr.msra.gmra.mrb[44].mxu1 %vm763_vm9, %v2630_v36 }
 0xec7   :  { %v2461_v4 = vpop.f32.mrb[46].mxu0 }
 0xec8   :  { %v2463_v43 = vpop.f32.mrb[47].mxu0 }
 0xf7a   :  { %v1991_v47 = vpop.f32.mrb[44].mxu1 }
 0xf7b   :  { %v1992_v45 = vadd.f32 %v1991_v47, %v1946_v44  ;;  %v1993_v22 = vpop.f32.mrb[45].mxu1 }
 0xf7c   :  { %v1994_v58 = vadd.f32 %v1993_v22, %v1946_v44  ;;  %v1995_v59 = vpop.f32.mrb[46].mxu1 }
 0xf7d   :  { %v2075_v46 = vadd.f32 %v2074_v41, %v1992_v45  ;;  %v1996_v48 = vpop.f32.mrb[47].mxu1 }
 0xf7e   :  { %v2077_v49 = vadd.f32 %v2076_v42, %v1994_v58 }
 0xf7f   :  { %v2636_v50 = vadd.f32 %v2461_v4, %v2075_v46 }
 0xf80   :  { %v2637_v51 = vadd.f32 %v2463_v43, %v2077_v49 }
 0xf81   :  { %v2468_v53 = vmul.f32 %v2636_v50, %v2636_v50  ;;  %2466 = vst [vmem:[#allocation2] sm:$0xff] %v2636_v50 }
 0xf82   :  { %v2469_v55 = vmul.f32 %v2637_v51, %v2637_v51  ;;  %2467 = vst [vmem:[#allocation2 + $0x8] sm:$0xff] %v2637_v51 }
 0xf83   :  { %v2470_v56 = vrot.slane %v2468_v53, 4 }
 0xf84   :  { %2885 = shalt.err (!%p2882_p4)
}
 0xf85   :  { %s2886_s18 = scalar_lea.hbm %s3459_s12, 256 }
 0xf86   :  { %p2887_p5 = scmp.ne.s32.totalorder %s3459_s12, %s2886_s18  ;;  %p2890_p6 = scmp.lt.u32.totalorder %s2886_s18, %s3459_s12 }
 0xf88   :  { %p2892_p7 = pnand %p2890_p6, %p2887_p5 }
 0xf8a   :  { %2895 = shalt.err (!%p2892_p7)
}
 0xf8b   :  { %2514 = dma.vmem_to_hbm [thread:$0]  %s2512_s25, 256, %s3459_s12, [#allocation3]   ;;  %v2476_v57 = vrot.slane %v2469_v55, 4  ;;  %v2471_v60 = vadd.f32 %v2470_v56, %v2468_v53  ;;  %v2905_v26 = vmov 1966171168   ;;  %vm2502_vm10 = vcmp.lt.s32.totalorder %v131_v19, 256 }
 0xf8c   :  { %v2486_v61 = vunpack.c.l.s4 %v2905_v26 }
 0xf8d   :  { %v2477_v21 = vadd.f32 %v2476_v57, %v2469_v55  ;;  %v2472_v2 = vrot.slane %v2471_v60, 2 }
 0xf8e   :  { %v2487_v9 = vunpack.c.0.s8 %v2486_v61 }
 0xf8f   :  { %v2478_v3 = vrot.slane %v2477_v21, 2  ;;  %v2473_v7 = vadd.f32 %v2472_v2, %v2471_v60 }
 0xf90   :  { %v2490_v24 = vsub.s32 %v2487_v9, %v3032_v20 }
 0xf91   :  { %v2479_v8 = vadd.f32 %v2478_v3, %v2477_v21  ;;  %v2474_v10 = vrot.slane %v2473_v7, 1 }
 0xf93   :  { %v2480_v12 = vrot.slane %v2479_v8, 1  ;;  %v2475_v31 = vadd.f32 %v2474_v10, %v2473_v7 }
 0xf95   :  { %v2481_v63 = vadd.f32 %v2480_v12, %v2479_v8 }
 0xf97   :  { %v2484_v25 = vcombine.low %v2475_v31, %v2481_v63 }
 0xf99   :  { %v2491_v14 = vrot.slane %v2484_v25, %v2490_v24 }
 0xf9b   :  { %v2498_v15 = vrot.slane %v2491_v14, %v2490_v24 }
 0xf9d   :  { %2504 = vst.msk [vmem:[%s3460_s13] sm:$0x3] %vm2502_vm10, %v2498_v15 }
 0xf9e   :  { %2896 = dma.done.wait [#allocation3], 256  }
 0xf9f   :  { %2897 = vsyncadd [#allocation3], 4294967040 }
 0xfa0   :  { %2522 = vsyncpa [#allocation3], 1 }

</bundles_post_ra>
